<compile_context>
chip_gen: v7x
topology: tpu7x:2x2x1
jax: 0.10.0
libtpu: 0.0.40
codegen_flags: <defaults>
</compile_context>

<pallas_src>
import jax
import jax.numpy as jnp
from jax.experimental import pallas as pl
from jax.experimental.pallas import tpu as pltpu


# ------------------------- Pallas kernels -------------------------

def fused_defense_classifier_kernel(
    x_ref,        # (1, C, P)    one image's channel planes (NCHW flattening), f32
    w1rgbT_ref,   # (H1, C)      INR first-layer RGB weights (transposed), f32
    coordh_ref,   # (H1, P)      precomputed coord contribution + bias, f32
    w2T_ref,      # (C, H1)      INR second-layer weights (transposed), f32
    b2c_ref,      # (C, 1)       INR second-layer bias (column), f32
    cw1_ref,      # (C, P, CH1)  classifier first layer, NCHW-major, bf16
    cb1_ref,      # (1, CH1)     f32
    cw2_ref,      # (CH1, NPAD)  f32 (logits padded to 128 lanes)
    cb2_ref,      # (1, NPAD)    f32
    out_ref,      # (1, 1, NPAD) f32
):
    xc = x_ref[0]                                               # (C, P) f32

    # ---- INR defense: per-pixel MLP, pixels in lanes ----
    h = jnp.dot(w1rgbT_ref[...], xc,
                preferred_element_type=jnp.float32)             # (H1, P)
    h = jnp.maximum(h + coordh_ref[...], 0.0)
    recon = jnp.dot(w2T_ref[...], h,
                    preferred_element_type=jnp.float32)         # (C, P)
    recon = jax.nn.sigmoid(recon + b2c_ref[...])                # defended image, [0,1]

    # ---- classifier: flatten(NCHW) -> hidden -> padded logits ----
    recon_b = recon.astype(cw1_ref.dtype)                       # bf16 operands, f32 acc
    ch = cb1_ref[...]                                           # (1, CH1) f32
    for c in range(recon.shape[0]):                             # static unroll, C=3
        ch = ch + jnp.dot(recon_b[c:c + 1, :], cw1_ref[c],
                          preferred_element_type=jnp.float32)
    ch = jnp.maximum(ch, 0.0)
    out_ref[0] = jnp.dot(ch, cw2_ref[...],
                         preferred_element_type=jnp.float32) + cb2_ref[...]


def classifier_only_kernel(x_ref, cw1_ref, cb1_ref, cw2_ref, cb2_ref, out_ref):
    # Non-adaptive path (AdaptiveAttackModel with adaptive=False): classifier only.
    xc = x_ref[0].astype(cw1_ref.dtype)                         # (C, P) bf16
    ch = cb1_ref[...]
    for c in range(xc.shape[0]):
        ch = ch + jnp.dot(xc[c:c + 1, :], cw1_ref[c],
                          preferred_element_type=jnp.float32)
    ch = jnp.maximum(ch, 0.0)
    out_ref[0] = jnp.dot(ch, cw2_ref[...],
                         preferred_element_type=jnp.float32) + cb2_ref[...]


# ------------------------- Parameters -------------------------

def make_params(key, *, H=32, W=32, C=3, inr_hidden=128, cls_hidden=128,
                n_classes=10, n_pad=128):
    ks = jax.random.split(key, 8)
    feat_dim = C + 2                      # RGB + normalized (x, y) coords
    P = H * W

    inr_w1 = jax.random.normal(ks[0], (feat_dim, inr_hidden), jnp.float32) * 0.3
    inr_b1 = jax.random.normal(ks[1], (inr_hidden,), jnp.float32) * 0.05
    inr_w2 = jax.random.normal(ks[2], (inr_hidden, C), jnp.float32) * 0.3
    inr_b2 = jax.random.normal(ks[3], (C,), jnp.float32) * 0.05
    cls_w1 = jax.random.normal(ks[4], (C * P, cls_hidden), jnp.float32) * 0.02
    cls_b1 = jax.random.normal(ks[5], (cls_hidden,), jnp.float32) * 0.05
    cls_w2 = jax.random.normal(ks[6], (cls_hidden, n_classes), jnp.float32) * 0.1
    cls_b2 = jax.random.normal(ks[7], (n_classes,), jnp.float32) * 0.05

    # normalized pixel coordinates in [-1, 1]; pixel index p = h*W + w (row-major)
    ys = jnp.linspace(-1.0, 1.0, H, dtype=jnp.float32)
    xs = jnp.linspace(-1.0, 1.0, W, dtype=jnp.float32)
    yy, xx = jnp.meshgrid(ys, xs, indexing="ij")
    coords_t = jnp.stack([xx.reshape(-1), yy.reshape(-1)], axis=0)   # (2, P)

    # batch-invariant coordinate contribution of the INR first layer (+ bias)
    coord_h = (jnp.dot(inr_w1[C:].T, coords_t, precision="highest")
               + inr_b1[:, None])                                     # (H1, P)

    # pad classifier logits lane dim to a full 128-lane vreg row
    cls_w2p = jnp.zeros((cls_hidden, n_pad), jnp.float32).at[:, :n_classes].set(cls_w2)
    cls_b2p = jnp.zeros((1, n_pad), jnp.float32).at[0, :n_classes].set(cls_b2)

    return {
        # kernel-ready packed tensors
        "inr_w1rgbT": inr_w1[:C].T,                              # (H1, C)
        "coord_h": coord_h,                                      # (H1, P)
        "inr_w2T": inr_w2.T,                                     # (C, H1)
        "inr_b2c": inr_b2[:, None],                              # (C, 1)
        "cls_w1r": cls_w1.reshape(C, P, cls_hidden).astype(jnp.bfloat16),
        "cls_b1": cls_b1[None, :],                               # (1, CH1)
        "cls_w2p": cls_w2p,                                      # (CH1, NPAD)
        "cls_b2p": cls_b2p,                                      # (1, NPAD)
        "n_classes": n_classes,
        # raw weights for the pure-JAX reference
        "_raw": dict(inr_w1=inr_w1, inr_b1=inr_b1, inr_w2=inr_w2, inr_b2=inr_b2,
                     cls_w1=cls_w1, cls_b1=cls_b1, cls_w2=cls_w2, cls_b2=cls_b2),
    }


# ------------------------- Forward wrapper -------------------------

def adaptive_attack_forward(x_nchw, params, *, adaptive=True):
    """Forward pass matching AdaptiveAttackModel.forward semantics.

    x_nchw: (B, 3, 32, 32) float32 in [0, 1]  (PyTorch NCHW convention)
    returns: (B, 10) float32 logits
    """
    B, C, H, W = x_nchw.shape
    P = H * W
    xp = x_nchw.astype(jnp.float32).reshape(B, C, P)   # channel planes (free bitcast)

    H1 = params["inr_w1rgbT"].shape[0]
    CH1 = params["cls_b1"].shape[1]
    NPAD = params["cls_w2p"].shape[1]
    n_classes = params["n_classes"]

    const2 = lambda b: (0, 0)

    if adaptive:
        out = pl.pallas_call(
            fused_defense_classifier_kernel,
            out_shape=jax.ShapeDtypeStruct((B, 1, NPAD), jnp.float32),
            grid_spec=pltpu.PrefetchScalarGridSpec(
                num_scalar_prefetch=0,
                grid=(B,),
                in_specs=[
                    pl.BlockSpec((1, C, P), lambda b: (b, 0, 0)),
                    pl.BlockSpec((H1, C), const2),
                    pl.BlockSpec((H1, P), const2),
                    pl.BlockSpec((C, H1), const2),
                    pl.BlockSpec((C, 1), const2),
                    pl.BlockSpec((C, P, CH1), lambda b: (0, 0, 0)),
                    pl.BlockSpec((1, CH1), const2),
                    pl.BlockSpec((CH1, NPAD), const2),
                    pl.BlockSpec((1, NPAD), const2),
                ],
                out_specs=pl.BlockSpec((1, 1, NPAD), lambda b: (b, 0, 0)),
            ),
            compiler_params=pltpu.CompilerParams(
                dimension_semantics=("parallel",)),
        )(xp, params["inr_w1rgbT"], params["coord_h"], params["inr_w2T"],
          params["inr_b2c"], params["cls_w1r"], params["cls_b1"],
          params["cls_w2p"], params["cls_b2p"])
    else:
        out = pl.pallas_call(
            classifier_only_kernel,
            out_shape=jax.ShapeDtypeStruct((B, 1, NPAD), jnp.float32),
            grid_spec=pltpu.PrefetchScalarGridSpec(
                num_scalar_prefetch=0,
                grid=(B,),
                in_specs=[
                    pl.BlockSpec((1, C, P), lambda b: (b, 0, 0)),
                    pl.BlockSpec((C, P, CH1), lambda b: (0, 0, 0)),
                    pl.BlockSpec((1, CH1), const2),
                    pl.BlockSpec((CH1, NPAD), const2),
                    pl.BlockSpec((1, NPAD), const2),
                ],
                out_specs=pl.BlockSpec((1, 1, NPAD), lambda b: (b, 0, 0)),
            ),
            compiler_params=pltpu.CompilerParams(
                dimension_semantics=("parallel",)),
        )(xp, params["cls_w1r"], params["cls_b1"],
          params["cls_w2p"], params["cls_b2p"])

    return out[:, 0, :n_classes]


# ------------------------- Pure-JAX reference -------------------------

def reference_forward(x_nchw, params, *, adaptive=True):
    r = params["_raw"]
    B, C, H, W = x_nchw.shape
    P = H * W
    hp = "highest"
    x = x_nchw.astype(jnp.float32)
    if adaptive:
        ys = jnp.linspace(-1.0, 1.0, H, dtype=jnp.float32)
        xs = jnp.linspace(-1.0, 1.0, W, dtype=jnp.float32)
        yy, xx = jnp.meshgrid(ys, xs, indexing="ij")
        coords = jnp.stack([xx, yy], axis=-1)                          # (H, W, 2)
        rgb = jnp.transpose(x, (0, 2, 3, 1))                           # (B, H, W, C)
        feats = jnp.concatenate(
            [rgb, jnp.broadcast_to(coords[None], (B, H, W, 2))], axis=-1)
        feats = feats.reshape(B * P, C + 2)
        h = jnp.maximum(jnp.dot(feats, r["inr_w1"], precision=hp) + r["inr_b1"], 0.0)
        recon = jax.nn.sigmoid(jnp.dot(h, r["inr_w2"], precision=hp) + r["inr_b2"])
        x = jnp.transpose(recon.reshape(B, H, W, C), (0, 3, 1, 2))     # back to NCHW
    flat = x.reshape(B, C * P)
    flat = flat.astype(jnp.bfloat16).astype(jnp.float32)               # match kernel's bf16 operands
    w1 = params["cls_w1r"].astype(jnp.float32).reshape(C * P, -1)
    h = jnp.maximum(jnp.dot(flat, w1, precision=hp) + r["cls_b1"], 0.0)
    return jnp.dot(h, r["cls_w2"], precision=hp) + r["cls_b2"]


if __name__ == "__main__":
    key = jax.random.PRNGKey(0)
    k_params, k_x = jax.random.split(key)

    B, C, H, W = 2, 3, 32, 32   # CIFAR-10 shapes (module hard-codes height=32, width=32)
    params = make_params(k_params, H=H, W=W, C=C)
    x = jax.random.uniform(k_x, (B, C, H, W), dtype=jnp.float32)   # NCHW, like PyTorch

    # adaptive=True: INR defense + classifier fused in one Pallas kernel
    logits = jax.block_until_ready(adaptive_attack_forward(x, params, adaptive=True))
    assert logits.shape == (B, 10) and logits.dtype == jnp.float32
    assert bool(jnp.all(jnp.isfinite(logits)))
    ref = reference_forward(x, params, adaptive=True)
    assert float(jnp.max(jnp.abs(logits - ref))) < 5e-2

    # adaptive=False: classifier-only Pallas kernel
    logits_na = jax.block_until_ready(adaptive_attack_forward(x, params, adaptive=False))
    ref_na = reference_forward(x, params, adaptive=False)
    assert float(jnp.max(jnp.abs(logits_na - ref_na))) < 5e-2

    print("KERNEL_OK")
</pallas_src>

<mosaic_0001>
module attributes {stable_mosaic.version = 11 : i64} {
  func.func @fused_defense_classifier_kernel(%arg0: i32, %arg1: memref<1x3x1024xf32, #tpu.memory_space<vmem>>, %arg2: memref<128x3xf32, #tpu.memory_space<vmem>>, %arg3: memref<128x1024xf32, #tpu.memory_space<vmem>>, %arg4: memref<3x128xf32, #tpu.memory_space<vmem>>, %arg5: memref<3x1xf32, #tpu.memory_space<vmem>>, %arg6: memref<3x1024x128xbf16, #tpu.memory_space<vmem>>, %arg7: memref<1x128xf32, #tpu.memory_space<vmem>>, %arg8: memref<128x128xf32, #tpu.memory_space<vmem>>, %arg9: memref<1x128xf32, #tpu.memory_space<vmem>>, %arg10: memref<1x1x128xf32, #tpu.memory_space<vmem>>) attributes {dimension_semantics = [#tpu.dimension_semantics<parallel>], iteration_bounds = array<i64: 2>, scalar_prefetch = 0 : i64, scratch_operands = 0 : i64, tpu.core_type = #tpu.core_type<tc>, window_params = [{transform_indices = @transform_0, window_bounds = array<i64: 1, 3, 1024>}, {pipeline_mode = #tpu.pipeline_mode<synchronous>, transform_indices = @transform_1, window_bounds = array<i64: 128, 3>}, {pipeline_mode = #tpu.pipeline_mode<synchronous>, transform_indices = @transform_2, window_bounds = array<i64: 128, 1024>}, {pipeline_mode = #tpu.pipeline_mode<synchronous>, transform_indices = @transform_3, window_bounds = array<i64: 3, 128>}, {pipeline_mode = #tpu.pipeline_mode<synchronous>, transform_indices = @transform_4, window_bounds = array<i64: 3, 1>}, {pipeline_mode = #tpu.pipeline_mode<synchronous>, transform_indices = @transform_5, window_bounds = array<i64: 3, 1024, 128>}, {pipeline_mode = #tpu.pipeline_mode<synchronous>, transform_indices = @transform_6, window_bounds = array<i64: 1, 128>}, {pipeline_mode = #tpu.pipeline_mode<synchronous>, transform_indices = @transform_7, window_bounds = array<i64: 128, 128>}, {pipeline_mode = #tpu.pipeline_mode<synchronous>, transform_indices = @transform_8, window_bounds = array<i64: 1, 128>}, {transform_indices = @transform_9, window_bounds = array<i64: 1, 1, 128>}]} {
    %c0 = arith.constant 0 : index
    %c0_0 = arith.constant 0 : index
    %c0_1 = arith.constant 0 : index
    %0 = vector.load %arg1[%c0, %c0_0, %c0_1] : memref<1x3x1024xf32, #tpu.memory_space<vmem>>, vector<1x3x1024xf32>
    %1 = vector.shape_cast %0 : vector<1x3x1024xf32> to vector<3x1024xf32>
    %c0_2 = arith.constant 0 : index
    %c0_3 = arith.constant 0 : index
    %2 = vector.load %arg2[%c0_2, %c0_3] : memref<128x3xf32, #tpu.memory_space<vmem>>, vector<128x3xf32>
    %cst = arith.constant dense<0.000000e+00> : vector<128x1024xf32>
    %3 = tpu.matmul %2, %1, %cst {dimension_numbers = #tpu.dot_dimension_numbers<[1], [0], [0], [1], [0, 0, 1, 1], [], []>} : vector<128x3xf32>, vector<3x1024xf32>, vector<128x1024xf32> -> vector<128x1024xf32>
    %c0_4 = arith.constant 0 : index
    %c0_5 = arith.constant 0 : index
    %4 = vector.load %arg3[%c0_4, %c0_5] : memref<128x1024xf32, #tpu.memory_space<vmem>>, vector<128x1024xf32>
    %5 = arith.addf %3, %4 : vector<128x1024xf32>
    %cst_6 = arith.constant 0.000000e+00 : f32
    %6 = vector.broadcast %cst_6 : f32 to vector<128x1024xf32>
    %7 = arith.maximumf %5, %6 : vector<128x1024xf32>
    %c0_7 = arith.constant 0 : index
    %c0_8 = arith.constant 0 : index
    %8 = vector.load %arg4[%c0_7, %c0_8] : memref<3x128xf32, #tpu.memory_space<vmem>>, vector<3x128xf32>
    %cst_9 = arith.constant dense<0.000000e+00> : vector<3x1024xf32>
    %9 = tpu.matmul %8, %7, %cst_9 {dimension_numbers = #tpu.dot_dimension_numbers<[1], [0], [0], [1], [0, 0, 1, 1], [], []>} : vector<3x128xf32>, vector<128x1024xf32>, vector<3x1024xf32> -> vector<3x1024xf32>
    %c0_10 = arith.constant 0 : index
    %c0_11 = arith.constant 0 : index
    %10 = vector.load %arg5[%c0_10, %c0_11] : memref<3x1xf32, #tpu.memory_space<vmem>>, vector<3x1xf32>
    %11 = vector.broadcast %10 : vector<3x1xf32> to vector<3x1024xf32>
    %12 = arith.addf %9, %11 : vector<3x1024xf32>
    %13 = arith.negf %12 : vector<3x1024xf32>
    %14 = math.exp %13 : vector<3x1024xf32>
    %cst_12 = arith.constant 1.000000e+00 : f32
    %15 = vector.broadcast %cst_12 : f32 to vector<3x1024xf32>
    %16 = arith.addf %15, %14 : vector<3x1024xf32>
    %17 = arith.divf %15, %16 : vector<3x1024xf32>
    %18 = arith.truncf %17 : vector<3x1024xf32> to vector<3x1024xbf16>
    %c0_13 = arith.constant 0 : index
    %c0_14 = arith.constant 0 : index
    %19 = vector.load %arg7[%c0_13, %c0_14] : memref<1x128xf32, #tpu.memory_space<vmem>>, vector<1x128xf32>
    %20 = vector.extract_strided_slice %18 {offsets = [0, 0], sizes = [1, 1024], strides = [1, 1]} : vector<3x1024xbf16> to vector<1x1024xbf16>
    %c0_15 = arith.constant 0 : index
    %c0_16 = arith.constant 0 : index
    %c0_17 = arith.constant 0 : index
    %21 = vector.load %arg6[%c0_15, %c0_16, %c0_17] : memref<3x1024x128xbf16, #tpu.memory_space<vmem>>, vector<1x1024x128xbf16>
    %22 = vector.shape_cast %21 : vector<1x1024x128xbf16> to vector<1024x128xbf16>
    %cst_18 = arith.constant dense<0.000000e+00> : vector<1x128xf32>
    %23 = tpu.matmul %20, %22, %cst_18 {dimension_numbers = #tpu.dot_dimension_numbers<[1], [0], [0], [1], [0, 0, 1, 1], [], []>} : vector<1x1024xbf16>, vector<1024x128xbf16>, vector<1x128xf32> -> vector<1x128xf32>
    %24 = arith.addf %19, %23 : vector<1x128xf32>
    %25 = vector.extract_strided_slice %18 {offsets = [1, 0], sizes = [1, 1024], strides = [1, 1]} : vector<3x1024xbf16> to vector<1x1024xbf16>
    %c1 = arith.constant 1 : index
    %c0_19 = arith.constant 0 : index
    %c0_20 = arith.constant 0 : index
    %26 = vector.load %arg6[%c1, %c0_19, %c0_20] : memref<3x1024x128xbf16, #tpu.memory_space<vmem>>, vector<1x1024x128xbf16>
    %27 = vector.shape_cast %26 : vector<1x1024x128xbf16> to vector<1024x128xbf16>
    %cst_21 = arith.constant dense<0.000000e+00> : vector<1x128xf32>
    %28 = tpu.matmul %25, %27, %cst_21 {dimension_numbers = #tpu.dot_dimension_numbers<[1], [0], [0], [1], [0, 0, 1, 1], [], []>} : vector<1x1024xbf16>, vector<1024x128xbf16>, vector<1x128xf32> -> vector<1x128xf32>
    %29 = arith.addf %24, %28 : vector<1x128xf32>
    %30 = vector.extract_strided_slice %18 {offsets = [2, 0], sizes = [1, 1024], strides = [1, 1]} : vector<3x1024xbf16> to vector<1x1024xbf16>
    %c2 = arith.constant 2 : index
    %c0_22 = arith.constant 0 : index
    %c0_23 = arith.constant 0 : index
    %31 = vector.load %arg6[%c2, %c0_22, %c0_23] : memref<3x1024x128xbf16, #tpu.memory_space<vmem>>, vector<1x1024x128xbf16>
    %32 = vector.shape_cast %31 : vector<1x1024x128xbf16> to vector<1024x128xbf16>
    %cst_24 = arith.constant dense<0.000000e+00> : vector<1x128xf32>
    %33 = tpu.matmul %30, %32, %cst_24 {dimension_numbers = #tpu.dot_dimension_numbers<[1], [0], [0], [1], [0, 0, 1, 1], [], []>} : vector<1x1024xbf16>, vector<1024x128xbf16>, vector<1x128xf32> -> vector<1x128xf32>
    %34 = arith.addf %29, %33 : vector<1x128xf32>
    %cst_25 = arith.constant 0.000000e+00 : f32
    %35 = vector.broadcast %cst_25 : f32 to vector<1x128xf32>
    %36 = arith.maximumf %34, %35 : vector<1x128xf32>
    %c0_26 = arith.constant 0 : index
    %c0_27 = arith.constant 0 : index
    %37 = vector.load %arg8[%c0_26, %c0_27] : memref<128x128xf32, #tpu.memory_space<vmem>>, vector<128x128xf32>
    %cst_28 = arith.constant dense<0.000000e+00> : vector<1x128xf32>
    %38 = tpu.matmul %36, %37, %cst_28 {dimension_numbers = #tpu.dot_dimension_numbers<[1], [0], [0], [1], [0, 0, 1, 1], [], []>} : vector<1x128xf32>, vector<128x128xf32>, vector<1x128xf32> -> vector<1x128xf32>
    %c0_29 = arith.constant 0 : index
    %c0_30 = arith.constant 0 : index
    %39 = vector.load %arg9[%c0_29, %c0_30] : memref<1x128xf32, #tpu.memory_space<vmem>>, vector<1x128xf32>
    %40 = arith.addf %38, %39 : vector<1x128xf32>
    %c0_31 = arith.constant 0 : index
    %c0_32 = arith.constant 0 : index
    %c0_33 = arith.constant 0 : index
    %41 = vector.load %arg10[%c0_31, %c0_32, %c0_33] : memref<1x1x128xf32, #tpu.memory_space<vmem>>, vector<1x1x128xf32>
    %42 = vector.shape_cast %41 : vector<1x1x128xf32> to vector<1x128xf32>
    %43 = vector.shape_cast %40 : vector<1x128xf32> to vector<1x1x128xf32>
    tpu.vector_store %arg10[%c0_31, %c0_32, %c0_33], %43 {strides = array<i32>} : memref<1x1x128xf32, #tpu.memory_space<vmem>>, vector<1x1x128xf32>,
    return
  }
  func.func @transform_0(%arg0: i32) -> (i32, i32, i32) {
    %c0_i32 = arith.constant 0 : i32
    %c0_i32_0 = arith.constant 0 : i32
    %c0_i32_1 = arith.constant 0 : i32
    return %arg0, %c0_i32, %c0_i32_0 : i32, i32, i32
  }
  func.func @transform_1(%arg0: i32) -> (i32, i32) {
    %c0_i32 = arith.constant 0 : i32
    %c0_i32_0 = arith.constant 0 : i32
    %c0_i32_1 = arith.constant 0 : i32
    return %c0_i32, %c0_i32_0 : i32, i32
  }
  func.func @transform_2(%arg0: i32) -> (i32, i32) {
    %c0_i32 = arith.constant 0 : i32
    %c0_i32_0 = arith.constant 0 : i32
    %c0_i32_1 = arith.constant 0 : i32
    return %c0_i32, %c0_i32_0 : i32, i32
  }
  func.func @transform_3(%arg0: i32) -> (i32, i32) {
    %c0_i32 = arith.constant 0 : i32
    %c0_i32_0 = arith.constant 0 : i32
    %c0_i32_1 = arith.constant 0 : i32
    return %c0_i32, %c0_i32_0 : i32, i32
  }
  func.func @transform_4(%arg0: i32) -> (i32, i32) {
    %c0_i32 = arith.constant 0 : i32
    %c0_i32_0 = arith.constant 0 : i32
    %c0_i32_1 = arith.constant 0 : i32
    return %c0_i32, %c0_i32_0 : i32, i32
  }
  func.func @transform_5(%arg0: i32) -> (i32, i32, i32) {
    %c0_i32 = arith.constant 0 : i32
    %c0_i32_0 = arith.constant 0 : i32
    %c0_i32_1 = arith.constant 0 : i32
    %c0_i32_2 = arith.constant 0 : i32
    return %c0_i32, %c0_i32_0, %c0_i32_1 : i32, i32, i32
  }
  func.func @transform_6(%arg0: i32) -> (i32, i32) {
    %c0_i32 = arith.constant 0 : i32
    %c0_i32_0 = arith.constant 0 : i32
    %c0_i32_1 = arith.constant 0 : i32
    return %c0_i32, %c0_i32_0 : i32, i32
  }
  func.func @transform_7(%arg0: i32) -> (i32, i32) {
    %c0_i32 = arith.constant 0 : i32
    %c0_i32_0 = arith.constant 0 : i32
    %c0_i32_1 = arith.constant 0 : i32
    return %c0_i32, %c0_i32_0 : i32, i32
  }
  func.func @transform_8(%arg0: i32) -> (i32, i32) {
    %c0_i32 = arith.constant 0 : i32
    %c0_i32_0 = arith.constant 0 : i32
    %c0_i32_1 = arith.constant 0 : i32
    return %c0_i32, %c0_i32_0 : i32, i32
  }
  func.func @transform_9(%arg0: i32) -> (i32, i32, i32) {
    %c0_i32 = arith.constant 0 : i32
    %c0_i32_0 = arith.constant 0 : i32
    %c0_i32_1 = arith.constant 0 : i32
    return %arg0, %c0_i32, %c0_i32_0 : i32, i32, i32
  }
}

</mosaic_0001>

<bundles_post_ra>
// kernel: tpu_custom_call.1
= control target key start
LH: loop header
LB: loop body
LE: loop exit
PB: predicated region body
PF: predicated region fallthrough
CT: control target
= control target key end

     0   :  { %14 = vsyncpa [#allocation3], 0  ;;  %s5786_s0 = inlined_call_operand.vmem [shape: f32[2,3,1024], index: 0, kind: input, shape index: {}]   ;;  %s5787_s1 = inlined_call_operand.vmem [shape: f32[128,3], index: 1, kind: input, shape index: {}]   ;;  %s5788_s2 = inlined_call_operand.hbm [shape: f32[128,1024], index: 2, kind: input, shape index: {}]   ;;  %s5789_s3 = inlined_call_operand.vmem [shape: f32[3,128], index: 3, kind: input, shape index: {}]   ;;  %s5790_s4 = inlined_call_operand.vmem [shape: f32[3,1], index: 4, kind: input, shape index: {}]   ;;  %s5791_s5 = inlined_call_operand.hbm [shape: bf16[3,1024,128], index: 5, kind: input, shape index: {}]   ;;  %s5792_s6 = inlined_call_operand.vmem [shape: f32[1,128], index: 6, kind: input, shape index: {}]   ;;  %s5793_s7 = inlined_call_operand.vmem [shape: f32[128,128], index: 7, kind: input, shape index: {}]   ;;  %s5794_s8 = inlined_call_operand.vmem [shape: f32[1,128], index: 8, kind: input, shape index: {}]   ;;  %s5795_s9 = inlined_call_operand.hbm [shape: f32[2,1,128], index: 9, kind: output, shape index: {}]  }
   0x1   :  { %15 = vsyncpa [#allocation6], 0 }
   0x2   :  { %16 = vsyncpa [#allocation4], 0 }
   0x3   :  { %18 = vsyncpa [#allocation4 + $0x1], 0  ;;  %s5199_s30 = smov 0   ;;  %s5201_s10 = smov 0  }
   0x4   :  { %s5203_s11 = smov 0   ;;  %s5205_s12 = smov 0  }
   0x5 LB: > { %5802 = sst [smem:[#allocation11_spill]] %s5133_s11  ;;  %s5220_s13 = sadd.s32 4294967295, %s5137_s12   ;;  %s5137_s12 = sphi %s5205_s12, %s5816_s12   ;;  %s5133_s11 = sphi %s5203_s11, %s5818_s11   ;;  %s5129_s10 = sphi %s5201_s10, %s5820_s10   ;;  %s5125_s30 = sphi %s5199_s30, %s5819_s30  }
   0x6   : > { %s3959_s14 = sadd.s32 4294967294, %s5137_s12   ;;  %s5224_s15 = sadd.s32 1, %s5137_s12  }
   0x7   : > { %5803 = sst [smem:[#allocation12_spill]] %s5224_s15  ;;  %s225_s16 = sadd.s32 1, %s5133_s11 }
   0x8   : > { %s222_s17 = ssub.s32 %s5137_s12, %s5224_s15  ;;  %p235_p0 = scmp.ne.s32.totalorder %s5133_s11, %s5129_s10 }
   0x9   : > { %p223_p1 = scmp.eq.s32.totalorder %s222_s17, 0  ;;  %p236_p2 = scmp.eq.s32.totalorder %s5220_s13, 1 }
   0xa   : > { %p241_p3 = scmp.ne.s32.totalorder %s5129_s10, %s5125_s30  ;;  %p242_p4 = scmp.eq.s32.totalorder %s3959_s14, 1 }
   0xb   : > { %s5235_s18 = scalar_select %p223_p1, %s5133_s11, %s225_s16  }
   0xc   : > { %p5237_p5 = por %p236_p2, %p235_p0  ;;  %p5241_p6 = por %p242_p4, %p241_p3 }
   0xd   : > { %5804 = sst [smem:[#allocation13_spill]] %s5235_s18  ;;  %p3960_p7 = scmp.ge.s32.totalorder %s5137_s12, 1 }
   0xe   : > { %s5805_s19 = scalar_select %p5237_p5, 1, 0 }
   0xf   : > { %s5806_s20 = scalar_select %p5241_p6, 1, 0 }
  0x10   : > { %p249_p8 = scmp.lt.s32.totalorder %s5137_s12, 3  ;;  %p5796_p9 = scmp.eq.s32.totalorder %s5220_s13, 0 }
  0x11   : > { %s5139_s22 = smov [#allocation2]   ;;  %s5140_s25 = smov [#allocation5]  }
  0x12   : > { %p5248_p10 = pnand %p3960_p7, %p249_p8  ;;  %s264_s23 = sshll.u32 %s5139_s22, 4  ;;  %s265_s23 = int_to_ptr.vmem [resolvable:$true] %s264_s23 }
  0x13   : > { %s283_s26 = sshll.u32 %s5140_s25, 4  ;;  %s5011_s29 = scalar_lea.hbm %s5788_s2, 16384  ;;  %s5260_s26 = int_to_ptr.vmem [resolvable:$true] %s283_s26 }
  0x14   : > { %s5807_s21 = scalar_select %p5248_p10, 1, 0 }
  0x15   : > { %p4725_p11 = pneg %p5248_p10  ;;  %p5012_p13 = scmp.ne.s32.totalorder %s5788_s2, %s5011_s29 }
  0x16   : > { %p5018_p3 = scmp.lt.u32.totalorder %s5011_s29, %s5788_s2 }
  0x17   : > { %p5256_p12 = pnand %p5796_p9, %p4725_p11 }
  0x19   : > { %p5013_p0 = pneg %p5256_p12 }
  0x1b   : > { %p5014_p1 = pnand %p5013_p0, %p5012_p13 }
  0x1d   : > { %p5015_p2 = pneg %p5014_p1 }
  0x1f   : > { %p5020_p4 = pnand %p5018_p3, %p5015_p2 }
  0x21   : > { %5023 = shalt.err (!%p5020_p4)
}
  0x22   : > { %s5024_s25 = scalar_lea.vmem %s265_s23, 16384  ;;  %p5032_p9 = scmp.lt.s32.totalorder %s265_s23, %s265_s23 }
  0x23   : > { %p5025_p7 = scmp.ne.s32.totalorder %s265_s23, %s5024_s25  ;;  %p5033_p6 = scmp.lt.s32.totalorder %s5024_s25, %s5024_s25 }
  0x25   : > { %p5027_p8 = pnand %p5025_p7, %p5013_p0  ;;  %p5034_p5 = por %p5033_p6, %p5032_p9 }
  0x27   : > { %p5028_p11 = pneg %p5027_p8 }
  0x29   : > { %p5035_p10 = pnand %p5034_p5, %p5028_p11 }
  0x2b   : > { %5038 = shalt.err (!%p5035_p10)
}
  0x2c   : > { %s5141_s27 = smov 1024   ;;  %s5142_s28 = smov 64  }
  0x2d   : > { %4728 = dma.hbm_to_vmem [thread:$0]  (!%p5256_p12), %s5788_s2, 16384, %s265_s23, [#allocation3], %s5141_s27, %s5141_s27, %s5142_s28  }
  0x2e   : > { %s5039_s22 = scalar_lea.hbm %s5791_s5, 24576 }
  0x2f   : > { %p5040_p13 = scmp.ne.s32.totalorder %s5791_s5, %s5039_s22  ;;  %p5046_p9 = scmp.lt.u32.totalorder %s5039_s22, %s5791_s5 }
  0x31   : > { %p5042_p5 = pnand %p5040_p13, %p5013_p0 }
  0x33   : > { %p5043_p6 = pneg %p5042_p5 }
  0x35   : > { %p5048_p10 = pnand %p5046_p9, %p5043_p6 }
  0x37   : > { %5051 = shalt.err (!%p5048_p10)
}
  0x38   : > { %s5052_s23 = scalar_lea.vmem %s5260_s26, 24576  ;;  %p5060_p4 = scmp.lt.s32.totalorder %s5260_s26, %s5260_s26 }
  0x39   : > { %p5053_p1 = scmp.ne.s32.totalorder %s5260_s26, %s5052_s23  ;;  %p5061_p7 = scmp.lt.s32.totalorder %s5052_s23, %s5052_s23 }
  0x3b   : > { %p5055_p2 = pnand %p5053_p1, %p5013_p0  ;;  %p5062_p8 = por %p5061_p7, %p5060_p4 }
  0x3d   : > { %p5056_p3 = pneg %p5055_p2 }
  0x3f   : > { %p5063_p11 = pnand %p5062_p8, %p5056_p3 }
  0x41   : > { %5066 = shalt.err (!%p5063_p11)
}
  0x42   : > { %s5143_s11 = smov 4   ;;  %p5809_p13 = scmp.ne.s32.totalorder %s5807_s21, 0 }
  0x43   : > { %4731 = dma.hbm_to_vmem [thread:$0]  (!%p5256_p12), %s5791_s5, 24576, %s5260_s26, [#allocation6], %s5142_s28, %s5142_s28, %s5143_s11  }
  0x44   : > { %316 = sbr.rel (%p5809_p13) target bundleno = 1270 (0x4f6), region = 56  ;;  %p5810_p0 = scmp.eq.s32.totalorder (!%p5809_p13), %s5220_s13, 0 }
  0x4b   : > { %5112 = dma.done.wait (%p5810_p0), [#allocation3], 16384   ;;  %p5811_p5 = pmov %p5810_p0 }
  0x4c   : > { %p5812_p6 = pmov %p5810_p0 }
  0x4d   : > { %5114 = vsyncadd (%p5811_p5), [#allocation3], 4294950912 }
  0x4e   : > { %5116 = dma.done.wait (%p5812_p6), [#allocation6], 24576   ;;  %p5813_p9 = pmov %p5810_p0 }
  0x4f   : > { %p355_p10 = scmp.lt.s32.totalorder %s5220_s13, 1  ;;  %v5144_v0 = vmov 0.0   ;;  %vm566_vm0 = vcmask 1042432   ;;  %v5329_v4 = vld [vmem:[%s5787_s1] sm:$0xff]  ;;  %vm517_vm1 = vcmask 23552   ;;  %v5334_v5 = vld [vmem:[%s5787_s1 + $0x68] sm:$0xff] }
  0x50   : > { %5118 = vsyncadd (%p5813_p9), [#allocation6], 4294942720  ;;  %647 = vmatprep.mubr.f32.mxu0 %v5144_v0  ;;  %725 = vmatprep.mubr.f32.mxu1 %v5144_v0  ;;  %v5349_v11 = vld [vmem:[%s5787_s1 + $0x8] sm:$0xff]  ;;  %v5354_v12 = vld [vmem:[%s5787_s1 + $0x70] sm:$0xff]  ;;  %vm5147_vm2 = vmmov 0   ;;  %s4241_s27 = sshll.u32 %s5220_s13, 4 }
  0x51   : > { %s356_s21 = scalar_select %p355_p10, %s5220_s13, 1  ;;  %v5361_v13 = vld [vmem:[%s5787_s1 + $0x10] sm:$0xff]  ;;  %v5366_v14 = vld [vmem:[%s5787_s1 + $0x78] sm:$0xff]  ;;  %v5391_v16 = vld [vmem:[%s5787_s1 + $0x20] sm:$0xff] }
  0x52   : > { %v5384_v15 = vld [vmem:[%s5787_s1 + $0x18] sm:$0xff]  ;;  %v5403_v17 = vld [vmem:[%s5787_s1 + $0x28] sm:$0xff]  ;;  %v5414_v18 = vld [vmem:[%s5787_s1 + $0x30] sm:$0xff]  ;;  %s5744_s17 = scalar_lea.hbm %s5795_s9, %s4241_s27  ;;  %p5814_p1 = scmp.ne.s32.totalorder %s5805_s19, 0 }
  0x53   : > { %s4244_s24 = sshll.u32 %s356_s21, 5  ;;  %v5425_v19 = vld [vmem:[%s5787_s1 + $0x38] sm:$0xff]  ;;  %v5436_v20 = vld [vmem:[%s5787_s1 + $0x40] sm:$0xff]  ;;  %v5447_v21 = vld [vmem:[%s5787_s1 + $0x48] sm:$0xff]  ;;  %s353_s21 = sand.u32 1, %s5129_s10  }
  0x54   : > { %s359_s28 = scalar_lea.vmem %s5786_s0, %s4244_s24  ;;  %v5458_v22 = vld [vmem:[%s5787_s1 + $0x50] sm:$0xff]  ;;  %v5469_v23 = vld [vmem:[%s5787_s1 + $0x58] sm:$0xff]  ;;  %v5480_v24 = vld [vmem:[%s5787_s1 + $0x60] sm:$0xff]  ;;  %s3870_s22 = scalar_lea.sflag [#allocation4], %s353_s21 }
  0x55   : > { %v361_v1 = vld [vmem:[%s359_s28] sm:$0x77]  ;;  %v362_v3 = vld [vmem:[%s359_s28 + $0x8] sm:$0x77]  ;;  %v364_v7 = vld [vmem:[%s359_s28 + $0x18] sm:$0x77] }
  0x56   : > { %v513_v2 = vcombine.high %v361_v1, %v361_v1  ;;  %v514_v6 = vcombine.high %v362_v3, %v362_v3  ;;  %v516_v8 = vcombine.high %v364_v7, %v364_v7  ;;  %v363_v9 = vld [vmem:[%s359_s28 + $0x10] sm:$0x77]  ;;  %v381_v25 = vld [vmem:[#allocation2] sm:$0xff]  ;;  %v382_v26 = vld [vmem:[#allocation2 + $0x8] sm:$0xff]  ;;  %s354_s28 = scalar_lea.vmem [#allocation7], %s353_s21  ;;  %s5148_s13 = smov [#allocation7]  }
  0x57   : > { %v515_v10 = vcombine.high %v363_v9, %v363_v9  ;;  %v389_v33 = vld [vmem:[#allocation2 + $0x40] sm:$0xff]  ;;  %v390_v34 = vld [vmem:[#allocation2 + $0x48] sm:$0xff]  ;;  %s3882_s29 = sshll.u32 %s354_s28, 4  ;;  %s5071_s23 = sshll.u32 %s5148_s13, 4  ;;  %s5746_s29 = int_to_ptr.vmem [resolvable:$true] %s3882_s29  ;;  %s5072_s23 = int_to_ptr.vmem [resolvable:$false] %s5071_s23 }
  0x58   : > { %3969 = vmatprep.subr.msk.mxu0 %vm566_vm0, %v513_v2  ;;  %4713 = vmatprep.subr.msk.mxu1 %vm566_vm0, %v513_v2  ;;  %v493_v35 = vld [vmem:[#allocation2 + $0x380] sm:$0xff]  ;;  %v494_v38 = vld [vmem:[#allocation2 + $0x388] sm:$0xff]  ;;  %s5067_s25 = scalar_lea.vmem %s5746_s29, 16  ;;  %s5073_s11 = scalar_lea.vmem %s5072_s23, 32 }
  0x59   : > { %3970 = vmatpush1.msk.msra.mxu0 %vm566_vm0, %v361_v1  ;;  %4714 = vmatpush1.msk.msra.mxu1 %vm566_vm0, %v361_v1  ;;  %v501_v43 = vld [vmem:[#allocation2 + $0x3c0] sm:$0xff]  ;;  %v502_v48 = vld [vmem:[#allocation2 + $0x3c8] sm:$0xff]  ;;  %p5068_p12 = scmp.ne.s32.totalorder %s5746_s29, %s5067_s25  ;;  %p5074_p4 = scmp.lt.s32.totalorder %s5746_s29, %s5072_s23 }
  0x5a   : > { %3971 = vmatmul.mubr.msk.f32.vlgmr.msra.gmra.mrb[0].mxu0 %vm517_vm1, %v5329_v4  ;;  %3984 = vmatmul.mubr.msk.f32.vlgmr.msra.gmra.mrb[0].mxu1 %vm517_vm1, %v5334_v5  ;;  %v397_v46 = vld [vmem:[#allocation2 + $0x80] sm:$0xff]  ;;  %v398_v50 = vld [vmem:[#allocation2 + $0x88] sm:$0xff]  ;;  %p5075_p7 = scmp.lt.s32.totalorder %s5073_s11, %s5067_s25 }
  0x5b   : > { %3987 = vmatprep.subr.msk.mxu1 %vm566_vm0, %v514_v6  ;;  %653 = vmatprep.mubr.f32.mxu0 %v5144_v0  ;;  %v405_v63 = vld [vmem:[#allocation2 + $0xc0] sm:$0xff]  ;;  %v383_v6 = vld [vmem:[#allocation2 + $0x10] sm:$0xff]  ;;  %p5069_p2 = pnand %p5068_p12, %p5814_p1 }
  0x5c   : > { %3988 = vmatpush1.msk.msra.mxu1 %vm566_vm0, %v362_v3  ;;  %731 = vmatprep.mubr.f32.mxu1 %v5144_v0  ;;  %v406_v3 = vld [vmem:[#allocation2 + $0xc8] sm:$0xff]  ;;  %p5076_p8 = por %p5075_p7, %p5074_p4 }
  0x5d   : > { %4023 = vmatprep.subr.msk.mxu1 %vm566_vm0, %v516_v8  ;;  %4005 = vmatprep.subr.msk.mxu0 %vm566_vm0, %v515_v10  ;;  %v384_v10 = vld [vmem:[#allocation2 + $0x18] sm:$0xff]  ;;  %p5070_p3 = pneg %p5069_p2 }
  0x5e   : > { %3972 = vmatmul.mubr.msk.f32.gmra.mrb[2].mxu0 %vm517_vm1, %v5349_v11  ;;  %3985 = vmatmul.mubr.msk.f32.gmra.mrb[2].mxu1 %vm517_vm1, %v5354_v12 }
  0x5f   : > { %659 = vmatprep.mubr.f32.mxu0 %v5144_v0  ;;  %737 = vmatprep.mubr.f32.mxu1 %v5144_v0  ;;  %p5077_p11 = pnand %p5076_p8, %p5070_p3 }
  0x60   : > { %4006 = vmatpush1.msk.msra.mxu0 %vm566_vm0, %v363_v9 }
  0x62   : > { %3973 = vmatmul.mubr.msk.f32.gmra.mrb[4].mxu0 %vm517_vm1, %v5361_v13  ;;  %3986 = vmatmul.mubr.msk.f32.gmra.mrb[4].mxu1 %vm517_vm1, %v5366_v14 }
  0x63   : > { %665 = vmatprep.mubr.f32.mxu0 %v5144_v0  ;;  %808 = vmatprep.mubr.f32.mxu1 %v5144_v0 }
  0x66   : > { %3974 = vmatmul.mubr.msk.f32.gmra.mrb[6].mxu0 %vm517_vm1, %v5384_v15  ;;  %3989 = vmatmul.mubr.msk.f32.vlgmr.msra.gmra.mrb[6].mxu1 %vm517_vm1, %v5329_v4 }
  0x67   : > { %4024 = vmatpush1.msk.msra.mxu1 %vm566_vm0, %v364_v7  ;;  %671 = vmatprep.mubr.f32.mxu0 %v5144_v0 }
  0x68   : > { %814 = vmatprep.mubr.f32.mxu1 %v5144_v0 }
  0x6a   : > { %3975 = vmatmul.mubr.msk.f32.gmra.mrb[8].mxu0 %vm517_vm1, %v5391_v16  ;;  %3990 = vmatmul.mubr.msk.f32.gmra.mrb[8].mxu1 %vm517_vm1, %v5349_v11 }
  0x6b   : > { %677 = vmatprep.mubr.f32.mxu0 %v5144_v0  ;;  %820 = vmatprep.mubr.f32.mxu1 %v5144_v0 }
  0x6e   : > { %3976 = vmatmul.mubr.msk.f32.gmra.mrb[10].mxu0 %vm517_vm1, %v5403_v17  ;;  %3991 = vmatmul.mubr.msk.f32.gmra.mrb[10].mxu1 %vm517_vm1, %v5361_v13 }
  0x6f   : > { %683 = vmatprep.mubr.f32.mxu0 %v5144_v0  ;;  %826 = vmatprep.mubr.f32.mxu1 %v5144_v0 }
  0x72   : > { %3977 = vmatmul.mubr.msk.f32.gmra.mrb[12].mxu0 %vm517_vm1, %v5414_v18  ;;  %3992 = vmatmul.mubr.msk.f32.gmra.mrb[12].mxu1 %vm517_vm1, %v5384_v15 }
  0x73   : > { %689 = vmatprep.mubr.f32.mxu0 %v5144_v0  ;;  %832 = vmatprep.mubr.f32.mxu1 %v5144_v0 }
  0x76   : > { %3978 = vmatmul.mubr.msk.f32.gmra.mrb[14].mxu0 %vm517_vm1, %v5425_v19  ;;  %3993 = vmatmul.mubr.msk.f32.gmra.mrb[14].mxu1 %vm517_vm1, %v5391_v16 }
  0x77   : > { %695 = vmatprep.mubr.f32.mxu0 %v5144_v0  ;;  %838 = vmatprep.mubr.f32.mxu1 %v5144_v0 }
  0x7a   : > { %3979 = vmatmul.mubr.msk.f32.gmra.mrb[16].mxu0 %vm517_vm1, %v5436_v20  ;;  %3994 = vmatmul.mubr.msk.f32.gmra.mrb[16].mxu1 %vm517_vm1, %v5403_v17 }
  0x7b   : > { %701 = vmatprep.mubr.f32.mxu0 %v5144_v0  ;;  %844 = vmatprep.mubr.f32.mxu1 %v5144_v0 }
  0x7e   : > { %3980 = vmatmul.mubr.msk.f32.gmra.mrb[18].mxu0 %vm517_vm1, %v5447_v21  ;;  %3995 = vmatmul.mubr.msk.f32.gmra.mrb[18].mxu1 %vm517_vm1, %v5414_v18 }
  0x7f   : > { %707 = vmatprep.mubr.f32.mxu0 %v5144_v0  ;;  %850 = vmatprep.mubr.f32.mxu1 %v5144_v0 }
  0x82   : > { %3981 = vmatmul.mubr.msk.f32.gmra.mrb[20].mxu0 %vm517_vm1, %v5458_v22  ;;  %3996 = vmatmul.mubr.msk.f32.gmra.mrb[20].mxu1 %vm517_vm1, %v5425_v19 }
  0x83   : > { %713 = vmatprep.mubr.f32.mxu0 %v5144_v0  ;;  %856 = vmatprep.mubr.f32.mxu1 %v5144_v0 }
  0x86   : > { %3982 = vmatmul.mubr.msk.f32.gmra.mrb[22].mxu0 %vm517_vm1, %v5469_v23  ;;  %3997 = vmatmul.mubr.msk.f32.gmra.mrb[22].mxu1 %vm517_vm1, %v5436_v20 }
  0x87   : > { %719 = vmatprep.mubr.f32.mxu0 %v5144_v0  ;;  %862 = vmatprep.mubr.f32.mxu1 %v5144_v0 }
  0x8a   : > { %3983 = vmatmul.mubr.msk.f32.gmra.mrb[24].mxu0 %vm517_vm1, %v5480_v24  ;;  %3998 = vmatmul.mubr.msk.f32.gmra.mrb[24].mxu1 %vm517_vm1, %v5447_v21 }
  0x8b   : > { %868 = vmatprep.mubr.f32.mxu1 %v5144_v0  ;;  %969 = vmatprep.mubr.f32.mxu0 %v5144_v0 }
  0x8e   : > { %3999 = vmatmul.mubr.msk.f32.gmra.mrb[26].mxu1 %vm517_vm1, %v5458_v22  ;;  %4007 = vmatmul.mubr.msk.f32.vlgmr.msra.gmra.mrb[26].mxu0 %vm517_vm1, %v5329_v4 }
  0x8f   : > { %874 = vmatprep.mubr.f32.mxu1 %v5144_v0  ;;  %975 = vmatprep.mubr.f32.mxu0 %v5144_v0 }
  0x92   : > { %4000 = vmatmul.mubr.msk.f32.gmra.mrb[28].mxu1 %vm517_vm1, %v5469_v23  ;;  %4008 = vmatmul.mubr.msk.f32.gmra.mrb[28].mxu0 %vm517_vm1, %v5349_v11 }
  0x93   : > { %880 = vmatprep.mubr.f32.mxu1 %v5144_v0  ;;  %981 = vmatprep.mubr.f32.mxu0 %v5144_v0 }
  0x96   : > { %4001 = vmatmul.mubr.msk.f32.gmra.mrb[30].mxu1 %vm517_vm1, %v5480_v24  ;;  %4009 = vmatmul.mubr.msk.f32.gmra.mrb[30].mxu0 %vm517_vm1, %v5361_v13 }
  0x97   : > { %886 = vmatprep.mubr.f32.mxu1 %v5144_v0  ;;  %987 = vmatprep.mubr.f32.mxu0 %v5144_v0 }
  0x9a   : > { %4002 = vmatmul.mubr.msk.f32.gmra.mrb[32].mxu1 %vm517_vm1, %v5334_v5  ;;  %4010 = vmatmul.mubr.msk.f32.gmra.mrb[32].mxu0 %vm517_vm1, %v5384_v15 }
  0x9b   : > { %892 = vmatprep.mubr.f32.mxu1 %v5144_v0  ;;  %993 = vmatprep.mubr.f32.mxu0 %v5144_v0 }
  0x9e   : > { %4003 = vmatmul.mubr.msk.f32.gmra.mrb[34].mxu1 %vm517_vm1, %v5354_v12  ;;  %4011 = vmatmul.mubr.msk.f32.gmra.mrb[34].mxu0 %vm517_vm1, %v5391_v16 }
  0x9f   : > { %898 = vmatprep.mubr.f32.mxu1 %v5144_v0  ;;  %999 = vmatprep.mubr.f32.mxu0 %v5144_v0 }
  0xa2   : > { %4004 = vmatmul.mubr.msk.f32.gmra.mrb[36].mxu1 %vm517_vm1, %v5366_v14  ;;  %4012 = vmatmul.mubr.msk.f32.gmra.mrb[36].mxu0 %vm517_vm1, %v5403_v17 }
  0xa3   : > { %1005 = vmatprep.mubr.f32.mxu0 %v5144_v0  ;;  %1130 = vmatprep.mubr.f32.mxu1 %v5144_v0 }
  0xa6   : > { %4013 = vmatmul.mubr.msk.f32.gmra.mrb[38].mxu0 %vm517_vm1, %v5414_v18  ;;  %4025 = vmatmul.mubr.msk.f32.vlgmr.msra.gmra.mrb[38].mxu1 %vm517_vm1, %v5329_v4 }
  0xa7   : > { %1011 = vmatprep.mubr.f32.mxu0 %v5144_v0  ;;  %1136 = vmatprep.mubr.f32.mxu1 %v5144_v0 }
  0xaa   : > { %4014 = vmatmul.mubr.msk.f32.gmra.mrb[40].mxu0 %vm517_vm1, %v5425_v19  ;;  %4026 = vmatmul.mubr.msk.f32.gmra.mrb[40].mxu1 %vm517_vm1, %v5349_v11 }
  0xab   : > { %1017 = vmatprep.mubr.f32.mxu0 %v5144_v0  ;;  %1142 = vmatprep.mubr.f32.mxu1 %v5144_v0 }
  0xae   : > { %4015 = vmatmul.mubr.msk.f32.gmra.mrb[42].mxu0 %vm517_vm1, %v5436_v20  ;;  %4027 = vmatmul.mubr.msk.f32.gmra.mrb[42].mxu1 %vm517_vm1, %v5361_v13 }
  0xaf   : > { %1023 = vmatprep.mubr.f32.mxu0 %v5144_v0  ;;  %1148 = vmatprep.mubr.f32.mxu1 %v5144_v0 }
  0xb2   : > { %4016 = vmatmul.mubr.msk.f32.gmra.mrb[44].mxu0 %vm517_vm1, %v5447_v21  ;;  %4028 = vmatmul.mubr.msk.f32.gmra.mrb[44].mxu1 %vm517_vm1, %v5384_v15 }
  0xb3   : > { %1029 = vmatprep.mubr.f32.mxu0 %v5144_v0  ;;  %1154 = vmatprep.mubr.f32.mxu1 %v5144_v0 }
  0xb6   : > { %4017 = vmatmul.mubr.msk.f32.gmra.mrb[46].mxu0 %vm517_vm1, %v5458_v22  ;;  %4029 = vmatmul.mubr.msk.f32.gmra.mrb[46].mxu1 %vm517_vm1, %v5391_v16  ;;  %v391_v16 = vld [vmem:[#allocation2 + $0x50] sm:$0xff] }
  0xb7   : > { %1035 = vmatprep.mubr.f32.mxu0 %v5144_v0  ;;  %1160 = vmatprep.mubr.f32.mxu1 %v5144_v0 }
  0xba   : > { %4018 = vmatmul.mubr.msk.f32.gmra.mrb[48].mxu0 %vm517_vm1, %v5469_v23  ;;  %4030 = vmatmul.mubr.msk.f32.gmra.mrb[48].mxu1 %vm517_vm1, %v5403_v17 }
  0xbb   : > { %1041 = vmatprep.mubr.f32.mxu0 %v5144_v0  ;;  %1166 = vmatprep.mubr.f32.mxu1 %v5144_v0 }
  0xbe   : > { %4019 = vmatmul.mubr.msk.f32.gmra.mrb[50].mxu0 %vm517_vm1, %v5480_v24  ;;  %4031 = vmatmul.mubr.msk.f32.gmra.mrb[50].mxu1 %vm517_vm1, %v5414_v18 }
  0xbf   : > { %1047 = vmatprep.mubr.f32.mxu0 %v5144_v0  ;;  %1172 = vmatprep.mubr.f32.mxu1 %v5144_v0 }
  0xc2   : > { %4020 = vmatmul.mubr.msk.f32.gmra.mrb[52].mxu0 %vm517_vm1, %v5334_v5  ;;  %4032 = vmatmul.mubr.msk.f32.gmra.mrb[52].mxu1 %vm517_vm1, %v5425_v19  ;;  %v413_v19 = vld [vmem:[#allocation2 + $0x100] sm:$0xff] }
  0xc3   : > { %1053 = vmatprep.mubr.f32.mxu0 %v5144_v0  ;;  %1178 = vmatprep.mubr.f32.mxu1 %v5144_v0 }
  0xc6   : > { %4021 = vmatmul.mubr.msk.f32.gmra.mrb[54].mxu0 %vm517_vm1, %v5354_v12  ;;  %4033 = vmatmul.mubr.msk.f32.gmra.mrb[54].mxu1 %vm517_vm1, %v5436_v20 }
  0xc7   : > { %1059 = vmatprep.mubr.f32.mxu0 %v5144_v0  ;;  %1184 = vmatprep.mubr.f32.mxu1 %v5144_v0 }
  0xca   : > { %4022 = vmatmul.mubr.msk.f32.gmra.mrb[56].mxu0 %vm517_vm1, %v5366_v14  ;;  %4034 = vmatmul.mubr.msk.f32.gmra.mrb[56].mxu1 %vm517_vm1, %v5447_v21  ;;  %v392_v21 = vld [vmem:[#allocation2 + $0x58] sm:$0xff] }
  0xcb   : > { %1190 = vmatprep.mubr.f32.mxu1 %v5144_v0  ;;  %1426 = vmatprep.mubr.f32.mxu0 %v5144_v0 }
  0xce   : > { %4035 = vmatmul.mubr.msk.f32.gmra.mrb[58].mxu1 %vm517_vm1, %v5458_v22 }
  0xcf   : > { %1196 = vmatprep.mubr.f32.mxu1 %v5144_v0 }
  0xd2   : > { %4036 = vmatmul.mubr.msk.f32.gmra.mrb[60].mxu1 %vm517_vm1, %v5469_v23  ;;  %v414_v23 = vld [vmem:[#allocation2 + $0x108] sm:$0xff] }
  0xd3   : > { %1202 = vmatprep.mubr.f32.mxu1 %v5144_v0 }
  0xd6   : > { %4037 = vmatmul.mubr.msk.f32.gmra.mrb[62].mxu1 %vm517_vm1, %v5480_v24 }
  0xd7   : > { %1208 = vmatprep.mubr.f32.mxu1 %v5144_v0 }
  0xda   : > { %4038 = vmatmul.mubr.msk.f32.gmra.mrb[64].mxu1 %vm517_vm1, %v5334_v5 }
  0xdb   : > { %1214 = vmatprep.mubr.f32.mxu1 %v5144_v0 }
  0xde   : > { %4039 = vmatmul.mubr.msk.f32.gmra.mrb[66].mxu1 %vm517_vm1, %v5354_v12 }
  0xdf   : > { %1220 = vmatprep.mubr.f32.mxu1 %v5144_v0 }
  0xe2   : > { %4040 = vmatmul.mubr.msk.f32.gmra.mrb[68].mxu1 %vm517_vm1, %v5366_v14 }
  0xe3   : > { %1497 = vmatprep.mubr.f32.mxu1 %v5144_v0 }
 0x12d   : > { %v5608_v27 = vpop.f32.mrb[0].mxu1  ;;  %v649_v28 = vpop.f32.mrb[0].mxu0 }
 0x12e   : > { %v5610_v29 = vpop.f32.mrb[1].mxu1  ;;  %v650_v30 = vadd.f32 %v649_v28, %v381_v25  ;;  %v651_v31 = vpop.f32.mrb[1].mxu0 }
 0x12f   : > { %v652_v32 = vadd.f32 %v651_v31, %v382_v26 }
 0x130   : > { %v1227_v40 = vmax.f32 %v650_v30, 0.0 }
 0x131   : > { %v733_v36 = vpop.f32.mrb[2].mxu1  ;;  %v655_v37 = vpop.f32.mrb[2].mxu0  ;;  %v1228_v44 = vmax.f32 %v652_v32, 0.0 }
 0x132   : > { %v735_v39 = vpop.f32.mrb[3].mxu1  ;;  %v656_v41 = vadd.f32 %v655_v37, %v389_v33  ;;  %v657_v42 = vpop.f32.mrb[3].mxu0  ;;  %v734_v47 = vadd.f32 %v733_v36, %v493_v35 }
 0x133   : > { %v658_v45 = vadd.f32 %v657_v42, %v390_v34  ;;  %v736_v51 = vadd.f32 %v735_v39, %v494_v38  ;;  %v421_v38 = vld [vmem:[#allocation2 + $0x140] sm:$0xff] }
 0x134   : > { %v1235_v49 = vmax.f32 %v656_v41, 0.0  ;;  %v1339_v1 = vmax.f32 %v734_v47, 0.0  ;;  %v422_v41 = vld [vmem:[#allocation2 + $0x148] sm:$0xff] }
 0x135   : > { %v739_v52 = vpop.f32.mrb[4].mxu1  ;;  %v1236_v53 = vmax.f32 %v658_v45, 0.0  ;;  %v661_v54 = vpop.f32.mrb[4].mxu0  ;;  %v1340_v4 = vmax.f32 %v736_v51, 0.0 }
 0x136   : > { %v740_v55 = vadd.f32 %v739_v52, %v501_v43  ;;  %v741_v56 = vpop.f32.mrb[5].mxu1  ;;  %v4563_v57 = vpack.c.bf16 %v1235_v49, %v1227_v40  ;;  %v662_v58 = vadd.f32 %v661_v54, %v397_v46  ;;  %v663_v59 = vpop.f32.mrb[5].mxu0  ;;  %v1356_v54 = vld [vmem:[%s5790_s4] sm:$0x7] }
 0x137   : > { %v742_v60 = vadd.f32 %v741_v56, %v502_v48  ;;  %v4561_v61 = vpack.c.bf16 %v1236_v53, %v1228_v44  ;;  %v664_v62 = vadd.f32 %v663_v59, %v398_v50  ;;  %v399_v44 = vld [vmem:[#allocation2 + $0x90] sm:$0xff]  ;;  %v400_v48 = vld [vmem:[#allocation2 + $0x98] sm:$0xff]  ;;  %v5145_v53 = vmov 0   ;;  %v429_v59 = vld [vmem:[#allocation2 + $0x180] sm:$0xff] }
 0x138   : > { %v1347_v2 = vmax.f32 %v740_v55, 0.0  ;;  %v1243_v12 = vmax.f32 %v662_v58, 0.0  ;;  %4782 = vset.pattern.permute.xlu0 %v5145_v53  ;;  %v407_v56 = vld [vmem:[#allocation2 + $0xd0] sm:$0xff]  ;;  %v453_v53 = vld [vmem:[#allocation2 + $0x240] sm:$0xff] }
 0x139   : > { %v1348_v5 = vmax.f32 %v742_v60, 0.0  ;;  %v810_v7 = vpop.f32.mrb[6].mxu1  ;;  %v667_v8 = vpop.f32.mrb[6].mxu0  ;;  %4562 = vmatprep.subr.bf16.mxu0 %v4561_v61  ;;  %v1244_v17 = vmax.f32 %v664_v62, 0.0  ;;  %1359 = vperm.xlu0 %4782, %v1356_v54   ;;  %v408_v61 = vld [vmem:[#allocation2 + $0xd8] sm:$0xff] }
 0x13a   : > { %v5612_v9 = vpack.c.bf16 %v1347_v2, %v1339_v1  ;;  %v812_v11 = vpop.f32.mrb[7].mxu1  ;;  %v668_v13 = vadd.f32 %v667_v8, %v405_v63  ;;  %v669_v14 = vpop.f32.mrb[7].mxu0  ;;  %4564 = vmatpush1.bf16.msra.mxu0 %v4563_v57  ;;  %v811_v20 = vadd.f32 %v810_v7, %v383_v6  ;;  %v430_v63 = vld [vmem:[#allocation2 + $0x188] sm:$0xff] }
 0x13b   : > { %v5614_v15 = vpack.c.bf16 %v1348_v5, %v1340_v4  ;;  %v670_v18 = vadd.f32 %v669_v14, %v406_v3  ;;  %v813_v24 = vadd.f32 %v812_v11, %v384_v10  ;;  %v437_v14 = vld [vmem:[#allocation2 + $0x1c0] sm:$0xff] }
 0x13c   : > { %v1251_v22 = vmax.f32 %v668_v13, 0.0  ;;  %v1229_v39 = vmax.f32 %v811_v20, 0.0 }
 0x13d   : > { %v816_v25 = vpop.f32.mrb[8].mxu1  ;;  %v1252_v26 = vmax.f32 %v670_v18, 0.0  ;;  %v673_v28 = vpop.f32.mrb[8].mxu0  ;;  %v1230_v42 = vmax.f32 %v813_v24, 0.0  ;;  %v438_v18 = vld [vmem:[#allocation2 + $0x1c8] sm:$0xff] }
 0x13e   : > { %v817_v30 = vadd.f32 %v816_v25, %v391_v16  ;;  %v818_v31 = vpop.f32.mrb[9].mxu1  ;;  %v4567_v32 = vpack.c.bf16 %v1251_v22, %v1243_v12  ;;  %v674_v33 = vadd.f32 %v673_v28, %v413_v19  ;;  %v675_v34 = vpop.f32.mrb[9].mxu0  ;;  %v416_v25 = vld [vmem:[#allocation2 + $0x118] sm:$0xff] }
 0x13f   : > { %v819_v35 = vadd.f32 %v818_v31, %v392_v21  ;;  %v4565_v36 = vpack.c.bf16 %v1252_v26, %v1244_v17  ;;  %v676_v37 = vadd.f32 %v675_v34, %v414_v23  ;;  %v415_v21 = vld [vmem:[#allocation2 + $0x110] sm:$0xff] }
 0x140   : > { %v1237_v40 = vmax.f32 %v817_v30, 0.0  ;;  %v1259_v50 = vmax.f32 %v674_v33, 0.0  ;;  %v423_v33 = vld [vmem:[#allocation2 + $0x150] sm:$0xff] }
 0x141   : > { %v1238_v43 = vmax.f32 %v819_v35, 0.0  ;;  %v822_v45 = vpop.f32.mrb[10].mxu1  ;;  %v679_v46 = vpop.f32.mrb[10].mxu0  ;;  %4566 = vmatprep.subr.bf16.mxu0 %v4565_v36  ;;  %v1260_v57 = vmax.f32 %v676_v37, 0.0  ;;  %v445_v36 = vld [vmem:[#allocation2 + $0x200] sm:$0xff] }
 0x142   : > { %v4595_v47 = vpack.c.bf16 %v1237_v40, %v1229_v39  ;;  %v824_v49 = vpop.f32.mrb[11].mxu1  ;;  %v680_v51 = vadd.f32 %v679_v46, %v421_v38  ;;  %v681_v52 = vpop.f32.mrb[11].mxu0  ;;  %4568 = vmatpush1.bf16.msra.mxu0 %v4567_v32  ;;  %v823_v60 = vadd.f32 %v822_v45, %v399_v44  ;;  %v424_v38 = vld [vmem:[#allocation2 + $0x158] sm:$0xff]  ;;  %v446_v40 = vld [vmem:[#allocation2 + $0x208] sm:$0xff] }
 0x143   : > { %v4593_v55 = vpack.c.bf16 %v1238_v43, %v1230_v42  ;;  %v682_v58 = vadd.f32 %v681_v52, %v422_v41  ;;  %v825_v1 = vadd.f32 %v824_v49, %v400_v48 }
 0x144   : > { %v1267_v62 = vmax.f32 %v680_v51, 0.0  ;;  %v1245_v16 = vmax.f32 %v823_v60, 0.0 }
 0x145   : > { %v828_v2 = vpop.f32.mrb[12].mxu1  ;;  %4594 = vmatprep.subr.bf16.mxu1 %v4593_v55  ;;  %v1268_v3 = vmax.f32 %v682_v58, 0.0  ;;  %v685_v4 = vpop.f32.mrb[12].mxu0  ;;  %v1246_v19 = vmax.f32 %v825_v1, 0.0 }
 0x146   : > { %v829_v5 = vadd.f32 %v828_v2, %v407_v56  ;;  %v830_v6 = vpop.f32.mrb[13].mxu1  ;;  %4596 = vmatpush1.bf16.msra.mxu1 %v4595_v47  ;;  %v4571_v7 = vpack.c.bf16 %v1267_v62, %v1259_v50  ;;  %v686_v8 = vadd.f32 %v685_v4, %v429_v59  ;;  %v687_v10 = vpop.f32.mrb[13].mxu0  ;;  %v454_v56 = vld [vmem:[#allocation2 + $0x248] sm:$0xff]  ;;  %v431_v59 = vld [vmem:[#allocation2 + $0x190] sm:$0xff] }
 0x147   : > { %v831_v11 = vadd.f32 %v830_v6, %v408_v61  ;;  %v4569_v12 = vpack.c.bf16 %v1268_v3, %v1260_v57  ;;  %v688_v13 = vadd.f32 %v687_v10, %v430_v63  ;;  %v432_v63 = vld [vmem:[#allocation2 + $0x198] sm:$0xff]  ;;  %v461_v10 = vld [vmem:[#allocation2 + $0x280] sm:$0xff] }
 0x148   : > { %v1253_v17 = vmax.f32 %v829_v5, 0.0  ;;  %v1275_v28 = vmax.f32 %v686_v8, 0.0 }
 0x149   : > { %v1254_v20 = vmax.f32 %v831_v11, 0.0  ;;  %v834_v22 = vpop.f32.mrb[14].mxu1  ;;  %v691_v23 = vpop.f32.mrb[14].mxu0  ;;  %4570 = vmatprep.subr.bf16.mxu0 %v4569_v12  ;;  %v1276_v34 = vmax.f32 %v688_v13, 0.0  ;;  %v440_v13 = vld [vmem:[#allocation2 + $0x1d8] sm:$0xff] }
 0x14a   : > { %v4599_v24 = vpack.c.bf16 %v1253_v17, %v1245_v16  ;;  %v836_v26 = vpop.f32.mrb[15].mxu1  ;;  %v692_v30 = vadd.f32 %v691_v23, %v437_v14  ;;  %v693_v31 = vpop.f32.mrb[15].mxu0  ;;  %4572 = vmatpush1.bf16.msra.mxu0 %v4571_v7  ;;  %v835_v37 = vadd.f32 %v834_v22, %v415_v21  ;;  %v439_v7 = vld [vmem:[#allocation2 + $0x1d0] sm:$0xff]  ;;  %v462_v14 = vld [vmem:[#allocation2 + $0x288] sm:$0xff] }
 0x14b   : > { %v4597_v32 = vpack.c.bf16 %v1254_v20, %v1246_v19  ;;  %v694_v35 = vadd.f32 %v693_v31, %v438_v18  ;;  %v837_v41 = vadd.f32 %v836_v26, %v416_v25 }
 0x14c   : > { %v1283_v39 = vmax.f32 %v692_v30, 0.0  ;;  %v1261_v54 = vmax.f32 %v835_v37, 0.0  ;;  %v469_v30 = vld [vmem:[#allocation2 + $0x2c0] sm:$0xff] }
 0x14d   : > { %v840_v42 = vpop.f32.mrb[16].mxu1  ;;  %4598 = vmatprep.subr.bf16.mxu1 %v4597_v32  ;;  %v1284_v43 = vmax.f32 %v694_v35, 0.0  ;;  %v697_v44 = vpop.f32.mrb[16].mxu0  ;;  %v1262_v57 = vmax.f32 %v837_v41, 0.0 }
 0x14e   : > { %v841_v45 = vadd.f32 %v840_v42, %v423_v33  ;;  %v842_v46 = vpop.f32.mrb[17].mxu1  ;;  %4600 = vmatpush1.bf16.msra.mxu1 %v4599_v24  ;;  %v4575_v47 = vpack.c.bf16 %v1283_v39, %v1275_v28  ;;  %v698_v48 = vadd.f32 %v697_v44, %v445_v36  ;;  %v699_v49 = vpop.f32.mrb[17].mxu0  ;;  %v470_v33 = vld [vmem:[#allocation2 + $0x2c8] sm:$0xff] }
 0x14f   : > { %v843_v50 = vadd.f32 %v842_v46, %v424_v38  ;;  %v4573_v51 = vpack.c.bf16 %v1284_v43, %v1276_v34  ;;  %v700_v52 = vadd.f32 %v699_v49, %v446_v40  ;;  %v485_v34 = vld [vmem:[#allocation2 + $0x340] sm:$0xff]  ;;  %v447_v38 = vld [vmem:[#allocation2 + $0x210] sm:$0xff]  ;;  %v486_v40 = vld [vmem:[#allocation2 + $0x348] sm:$0xff] }
 0x150   : > { %v1269_v55 = vmax.f32 %v841_v45, 0.0  ;;  %v1291_v2 = vmax.f32 %v698_v48, 0.0  ;;  %v448_v45 = vld [vmem:[#allocation2 + $0x218] sm:$0xff] }
 0x151   : > { %v1270_v58 = vmax.f32 %v843_v50, 0.0  ;;  %v846_v60 = vpop.f32.mrb[18].mxu1  ;;  %v703_v61 = vpop.f32.mrb[18].mxu0  ;;  %4574 = vmatprep.subr.bf16.mxu0 %v4573_v51  ;;  %v1292_v6 = vmax.f32 %v700_v52, 0.0  ;;  %v477_v50 = vld [vmem:[#allocation2 + $0x300] sm:$0xff]  ;;  %v455_v51 = vld [vmem:[#allocation2 + $0x250] sm:$0xff]  ;;  %v728_v52 = vadd.f32 %v5608_v27, %v485_v34 }
 0x152   : > { %v4603_v62 = vpack.c.bf16 %v1269_v55, %v1261_v54  ;;  %v848_v1 = vpop.f32.mrb[19].mxu1  ;;  %v704_v3 = vadd.f32 %v703_v61, %v453_v53  ;;  %v705_v4 = vpop.f32.mrb[19].mxu0  ;;  %4576 = vmatpush1.bf16.msra.mxu0 %v4575_v47  ;;  %v847_v11 = vadd.f32 %v846_v60, %v431_v59  ;;  %v478_v55 = vld [vmem:[#allocation2 + $0x308] sm:$0xff]  ;;  %v472_v34 = vld [vmem:[#allocation2 + $0x2d8] sm:$0xff] }
 0x153   : > { %v4601_v5 = vpack.c.bf16 %v1270_v58, %v1262_v57  ;;  %v706_v8 = vadd.f32 %v705_v4, %v454_v56  ;;  %v849_v16 = vadd.f32 %v848_v1, %v432_v63  ;;  %v456_v56 = vld [vmem:[#allocation2 + $0x258] sm:$0xff]  ;;  %v730_v57 = vadd.f32 %v5610_v29, %v486_v40  ;;  %v463_v29 = vld [vmem:[#allocation2 + $0x290] sm:$0xff] }
 0x154   : > { %v1299_v12 = vmax.f32 %v704_v3, 0.0  ;;  %v1277_v31 = vmax.f32 %v847_v11, 0.0 }
 0x155   : > { %v852_v17 = vpop.f32.mrb[20].mxu1  ;;  %4602 = vmatprep.subr.bf16.mxu1 %v4601_v5  ;;  %v1300_v18 = vmax.f32 %v706_v8, 0.0  ;;  %v709_v19 = vpop.f32.mrb[20].mxu0  ;;  %v1278_v35 = vmax.f32 %v849_v16, 0.0 }
 0x156   : > { %v4579_v20 = vpack.c.bf16 %v1299_v12, %v1291_v2  ;;  %v853_v21 = vadd.f32 %v852_v17, %v439_v7  ;;  %v854_v22 = vpop.f32.mrb[21].mxu1  ;;  %4604 = vmatpush1.bf16.msra.mxu1 %v4603_v62  ;;  %v710_v23 = vadd.f32 %v709_v19, %v461_v10  ;;  %v711_v24 = vpop.f32.mrb[21].mxu0  ;;  %v1331_v7 = vmax.f32 %v728_v52, 0.0  ;;  %v386_v12 = vld [vmem:[#allocation2 + $0x28] sm:$0xff] }
 0x157   : > { %v4577_v25 = vpack.c.bf16 %v1300_v18, %v1292_v6  ;;  %v855_v26 = vadd.f32 %v854_v22, %v440_v13  ;;  %v712_v28 = vadd.f32 %v711_v24, %v462_v14  ;;  %v385_v6 = vld [vmem:[#allocation2 + $0x20] sm:$0xff]  ;;  %v1332_v13 = vmax.f32 %v730_v57, 0.0  ;;  %v464_v22 = vld [vmem:[#allocation2 + $0x298] sm:$0xff] }
 0x158   : > { %v1285_v32 = vmax.f32 %v853_v21, 0.0  ;;  %v1307_v42 = vmax.f32 %v710_v23, 0.0 }
 0x159   : > { %v1286_v36 = vmax.f32 %v855_v26, 0.0  ;;  %v715_v37 = vpop.f32.mrb[22].mxu0  ;;  %v858_v39 = vpop.f32.mrb[22].mxu1  ;;  %4578 = vmatprep.subr.bf16.mxu0 %v4577_v25  ;;  %v1308_v48 = vmax.f32 %v712_v28, 0.0 }
 0x15a   : > { %v4607_v41 = vpack.c.bf16 %v1285_v32, %v1277_v31  ;;  %v716_v43 = vadd.f32 %v715_v37, %v469_v30  ;;  %v717_v44 = vpop.f32.mrb[23].mxu0  ;;  %v860_v46 = vpop.f32.mrb[23].mxu1  ;;  %4580 = vmatpush1.bf16.msra.mxu0 %v4579_v20  ;;  %v859_v54 = vadd.f32 %v858_v39, %v447_v38  ;;  %v471_v30 = vld [vmem:[#allocation2 + $0x2d0] sm:$0xff]  ;;  %v393_v32 = vld [vmem:[#allocation2 + $0x60] sm:$0xff] }
 0x15b   : > { %v4605_v47 = vpack.c.bf16 %v1286_v36, %v1278_v35  ;;  %v718_v49 = vadd.f32 %v717_v44, %v470_v33  ;;  %v861_v59 = vadd.f32 %v860_v46, %v448_v45  ;;  %v394_v35 = vld [vmem:[#allocation2 + $0x68] sm:$0xff] }
 0x15c   : > { %v1315_v53 = vmax.f32 %v716_v43, 0.0  ;;  %v1293_v8 = vmax.f32 %v859_v54, 0.0  ;;  %v479_v54 = vld [vmem:[#allocation2 + $0x310] sm:$0xff] }
 0x15d   : > { %v1316_v58 = vmax.f32 %v718_v49, 0.0  ;;  %v721_v60 = vpop.f32.mrb[24].mxu0  ;;  %v864_v61 = vpop.f32.mrb[24].mxu1  ;;  %4606 = vmatprep.subr.bf16.mxu1 %v4605_v47  ;;  %v1294_v14 = vmax.f32 %v861_v59, 0.0  ;;  %v401_v47 = vld [vmem:[#allocation2 + $0xa0] sm:$0xff]  ;;  %v480_v59 = vld [vmem:[#allocation2 + $0x318] sm:$0xff] }
 0x15e   : > { %v4583_v62 = vpack.c.bf16 %v1315_v53, %v1307_v42  ;;  %v722_v63 = vadd.f32 %v721_v60, %v477_v50  ;;  %v865_v1 = vadd.f32 %v864_v61, %v455_v51  ;;  %v723_v2 = vpop.f32.mrb[25].mxu0  ;;  %v866_v3 = vpop.f32.mrb[25].mxu1  ;;  %4608 = vmatpush1.bf16.msra.mxu1 %v4607_v41  ;;  %v402_v51 = vld [vmem:[#allocation2 + $0xa8] sm:$0xff] }
 0x15f   : > { %v4581_v4 = vpack.c.bf16 %v1316_v58, %v1308_v48  ;;  %v724_v5 = vadd.f32 %v723_v2, %v478_v55  ;;  %v867_v27 = vadd.f32 %v866_v3, %v456_v56 }
 0x160   : > { %v1323_v10 = vmax.f32 %v722_v63, 0.0  ;;  %v1301_v11 = vmax.f32 %v865_v1, 0.0  ;;  %v487_v1 = vld [vmem:[#allocation2 + $0x350] sm:$0xff] }
 0x161   : > { %v1324_v16 = vmax.f32 %v724_v5, 0.0  ;;  %v1302_v17 = vmax.f32 %v867_v27, 0.0  ;;  %v870_v18 = vpop.f32.mrb[26].mxu1  ;;  %4582 = vmatprep.subr.bf16.mxu0 %v4581_v4  ;;  %v971_v19 = vpop.f32.mrb[26].mxu0  ;;  %v409_v4 = vld [vmem:[#allocation2 + $0xe0] sm:$0xff] }
 0x162   : > { %v4587_v20 = vpack.c.bf16 %v1331_v7, %v1323_v10  ;;  %v4611_v21 = vpack.c.bf16 %v1301_v11, %v1293_v8  ;;  %v872_v23 = vpop.f32.mrb[27].mxu1  ;;  %4584 = vmatpush1.bf16.msra.mxu0 %v4583_v62  ;;  %v972_v24 = vadd.f32 %v971_v19, %v385_v6  ;;  %v973_v25 = vpop.f32.mrb[27].mxu0  ;;  %v871_v33 = vadd.f32 %v870_v18, %v463_v29  ;;  %v5626_v5 = vld [vmem:[%s5789_s3] sm:$0x7]  ;;  %v488_v6 = vld [vmem:[#allocation2 + $0x358] sm:$0xff]  ;;  %v410_v7 = vld [vmem:[#allocation2 + $0xe8] sm:$0xff] }
 0x163   : > { %v4585_v26 = vpack.c.bf16 %v1332_v13, %v1324_v16  ;;  %v4609_v28 = vpack.c.bf16 %v1302_v17, %v1294_v14  ;;  %v974_v31 = vadd.f32 %v973_v25, %v386_v12  ;;  %v873_v36 = vadd.f32 %v872_v23, %v464_v22  ;;  %v417_v19 = vld [vmem:[#allocation2 + $0x120] sm:$0xff]  ;;  %v418_v23 = vld [vmem:[#allocation2 + $0x128] sm:$0xff] }
 0x164   : > { %v1231_v41 = vmax.f32 %v972_v24, 0.0  ;;  %v1309_v48 = vmax.f32 %v871_v33, 0.0  ;;  %v496_v33 = vld [vmem:[#allocation2 + $0x398] sm:$0xff] }
 0x165   : > { %v876_v37 = vpop.f32.mrb[28].mxu1  ;;  %4586 = vmatprep.subr.bf16.mxu0 %v4585_v26  ;;  %4610 = vmatprep.subr.bf16.mxu1 %v4609_v28  ;;  %v977_v38 = vpop.f32.mrb[28].mxu0  ;;  %v1232_v45 = vmax.f32 %v974_v31, 0.0  ;;  %v1310_v52 = vmax.f32 %v873_v36, 0.0  ;;  %v495_v26 = vld [vmem:[#allocation2 + $0x390] sm:$0xff] }
 0x166   : > { %v877_v39 = vadd.f32 %v876_v37, %v471_v30  ;;  %v878_v40 = vpop.f32.mrb[29].mxu1  ;;  %4588 = vmatpush1.bf16.msra.mxu0 %v4587_v20  ;;  %4612 = vmatpush1.bf16.msra.mxu1 %v4611_v21  ;;  %v978_v42 = vadd.f32 %v977_v38, %v393_v32  ;;  %v979_v43 = vpop.f32.mrb[29].mxu0 }
 0x167   : > { %v879_v44 = vadd.f32 %v878_v40, %v472_v34  ;;  %4590 = vmatprep.subr.bf16.mxu0 %v5614_v15  ;;  %v980_v46 = vadd.f32 %v979_v43, %v394_v35 }
 0x168   : > { %v1317_v49 = vmax.f32 %v877_v39, 0.0  ;;  %v1239_v50 = vmax.f32 %v978_v42, 0.0  ;;  %v503_v39 = vld [vmem:[#allocation2 + $0x3d0] sm:$0xff]  ;;  %v425_v42 = vld [vmem:[#allocation2 + $0x160] sm:$0xff] }
 0x169   : > { %v1318_v53 = vmax.f32 %v879_v44, 0.0  ;;  %v882_v55 = vpop.f32.mrb[30].mxu1  ;;  %v1240_v56 = vmax.f32 %v980_v46, 0.0  ;;  %v983_v57 = vpop.f32.mrb[30].mxu0  ;;  %v504_v44 = vld [vmem:[#allocation2 + $0x3d8] sm:$0xff] }
 0x16a   : > { %v4615_v58 = vpack.c.bf16 %v1317_v49, %v1309_v48  ;;  %v884_v60 = vpop.f32.mrb[31].mxu1  ;;  %4592 = vmatpush1.bf16.msra.mxu0 %v5612_v9  ;;  %v4627_v61 = vpack.c.bf16 %v1239_v50, %v1231_v41  ;;  %v984_v15 = vadd.f32 %v983_v57, %v401_v47  ;;  %v985_v62 = vpop.f32.mrb[31].mxu0  ;;  %v883_v27 = vadd.f32 %v882_v55, %v479_v54  ;;  %v433_v57 = vld [vmem:[#allocation2 + $0x1a0] sm:$0xff] }
 0x16b   : > { %v4613_v63 = vpack.c.bf16 %v1318_v53, %v1310_v52  ;;  %v4625_v2 = vpack.c.bf16 %v1240_v56, %v1232_v45  ;;  %v986_v3 = vadd.f32 %v985_v62, %v402_v51  ;;  %v885_v8 = vadd.f32 %v884_v60, %v480_v59  ;;  %v426_v45 = vld [vmem:[#allocation2 + $0x168] sm:$0xff] }
 0x16c   : > { %v1247_v12 = vmax.f32 %v984_v15, 0.0  ;;  %v1325_v20 = vmax.f32 %v883_v27, 0.0  ;;  %v388_v27 = vld [vmem:[#allocation2 + $0x38] sm:$0xff] }
 0x16d   : > { %v888_v10 = vpop.f32.mrb[32].mxu1  ;;  %4614 = vmatprep.subr.bf16.mxu1 %v4613_v63  ;;  %v989_v9 = vpop.f32.mrb[32].mxu0  ;;  %4626 = vmatprep.subr.bf16.mxu0 %v4625_v2  ;;  %v1248_v17 = vmax.f32 %v986_v3, 0.0  ;;  %v1326_v24 = vmax.f32 %v885_v8, 0.0  ;;  %v387_v63 = vld [vmem:[#allocation2 + $0x30] sm:$0xff] }
 0x16e   : > { %v889_v11 = vadd.f32 %v888_v10, %v487_v1  ;;  %v890_v29 = vpop.f32.mrb[33].mxu1  ;;  %4616 = vmatpush1.bf16.msra.mxu1 %v4615_v58  ;;  %v990_v13 = vadd.f32 %v989_v9, %v409_v4  ;;  %v991_v14 = vpop.f32.mrb[33].mxu0  ;;  %1427 = vmatmul.mubr.f32.vlgmr.msra.gmra.mrb[58].mxu0 %v5626_v5 }
 0x16f   : > { %v891_v16 = vadd.f32 %v890_v29, %v488_v6  ;;  %v992_v18 = vadd.f32 %v991_v14, %v410_v7  ;;  %4628 = vmatpush1.bf16.msra.mxu0 %v4627_v61  ;;  %1568 = vmatprep.mubr.f32.mxu0 %v5144_v0  ;;  %v434_v61 = vld [vmem:[#allocation2 + $0x1a8] sm:$0xff] }
 0x170   : > { %v1333_v21 = vmax.f32 %v889_v11, 0.0  ;;  %v1255_v22 = vmax.f32 %v990_v13, 0.0  ;;  %v395_v11 = vld [vmem:[#allocation2 + $0x70] sm:$0xff]  ;;  %v441_v13 = vld [vmem:[#allocation2 + $0x1e0] sm:$0xff] }
 0x171   : > { %v1334_v25 = vmax.f32 %v891_v16, 0.0  ;;  %v894_v28 = vpop.f32.mrb[34].mxu1  ;;  %v1256_v30 = vmax.f32 %v992_v18, 0.0  ;;  %v995_v31 = vpop.f32.mrb[34].mxu0  ;;  %v396_v16 = vld [vmem:[#allocation2 + $0x78] sm:$0xff] }
 0x172   : > { %v4619_v32 = vpack.c.bf16 %v1333_v21, %v1325_v20  ;;  %v896_v34 = vpop.f32.mrb[35].mxu1  ;;  %v4631_v35 = vpack.c.bf16 %v1255_v22, %v1247_v12  ;;  %v996_v36 = vadd.f32 %v995_v31, %v417_v19  ;;  %v997_v37 = vpop.f32.mrb[35].mxu0  ;;  %v895_v43 = vadd.f32 %v894_v28, %v495_v26  ;;  %v449_v31 = vld [vmem:[#allocation2 + $0x220] sm:$0xff] }
 0x173   : > { %v4617_v38 = vpack.c.bf16 %v1334_v25, %v1326_v24  ;;  %v4629_v40 = vpack.c.bf16 %v1256_v30, %v1248_v17  ;;  %v998_v41 = vadd.f32 %v997_v37, %v418_v23  ;;  %v897_v46 = vadd.f32 %v896_v34, %v496_v33  ;;  %v442_v17 = vld [vmem:[#allocation2 + $0x1e8] sm:$0xff] }
 0x174   : > { %v1263_v51 = vmax.f32 %v996_v36, 0.0  ;;  %v1341_v58 = vmax.f32 %v895_v43, 0.0  ;;  %v404_v43 = vld [vmem:[#allocation2 + $0xb8] sm:$0xff] }
 0x175   : > { %v900_v47 = vpop.f32.mrb[36].mxu1  ;;  %4618 = vmatprep.subr.bf16.mxu1 %v4617_v38  ;;  %v1001_v48 = vpop.f32.mrb[36].mxu0  ;;  %4630 = vmatprep.subr.bf16.mxu0 %v4629_v40  ;;  %v1264_v55 = vmax.f32 %v998_v41, 0.0  ;;  %v1342_v15 = vmax.f32 %v897_v46, 0.0  ;;  %v403_v38 = vld [vmem:[#allocation2 + $0xb0] sm:$0xff] }
 0x176   : > { %v901_v49 = vadd.f32 %v900_v47, %v503_v39  ;;  %v902_v50 = vpop.f32.mrb[37].mxu1  ;;  %4620 = vmatpush1.bf16.msra.mxu1 %v4619_v32  ;;  %v1002_v52 = vadd.f32 %v1001_v48, %v425_v42  ;;  %v1003_v53 = vpop.f32.mrb[37].mxu0  ;;  %4632 = vmatpush1.bf16.msra.mxu0 %v4631_v35  ;;  %v450_v35 = vld [vmem:[#allocation2 + $0x228] sm:$0xff] }
 0x177   : > { %v903_v54 = vadd.f32 %v902_v50, %v504_v44  ;;  %v1004_v56 = vadd.f32 %v1003_v53, %v426_v45 }
 0x178   : > { %v1349_v59 = vmax.f32 %v901_v49, 0.0  ;;  %v1271_v60 = vmax.f32 %v1002_v52, 0.0  ;;  %v411_v49 = vld [vmem:[#allocation2 + $0xf0] sm:$0xff]  ;;  %v457_v52 = vld [vmem:[#allocation2 + $0x260] sm:$0xff] }
 0x179   : > { %v1350_v62 = vmax.f32 %v903_v54, 0.0  ;;  %v1132_v1 = vpop.f32.mrb[38].mxu1  ;;  %v1272_v2 = vmax.f32 %v1004_v56, 0.0  ;;  %v1007_v3 = vpop.f32.mrb[38].mxu0  ;;  %v412_v54 = vld [vmem:[#allocation2 + $0xf8] sm:$0xff] }
 0x17a   : > { %v4623_v4 = vpack.c.bf16 %v1349_v59, %v1341_v58  ;;  %v1134_v6 = vpop.f32.mrb[39].mxu1  ;;  %v4635_v7 = vpack.c.bf16 %v1271_v60, %v1263_v51  ;;  %v1008_v8 = vadd.f32 %v1007_v3, %v433_v57  ;;  %v1009_v10 = vpop.f32.mrb[39].mxu0  ;;  %v1133_v14 = vadd.f32 %v1132_v1, %v387_v63  ;;  %v465_v3 = vld [vmem:[#allocation2 + $0x2a0] sm:$0xff] }
 0x17b   : > { %v4621_v9 = vpack.c.bf16 %v1350_v62, %v1342_v15  ;;  %v4633_v29 = vpack.c.bf16 %v1272_v2, %v1264_v55  ;;  %v1010_v12 = vadd.f32 %v1009_v10, %v434_v61  ;;  %v1135_v18 = vadd.f32 %v1134_v6, %v388_v27  ;;  %v458_v55 = vld [vmem:[#allocation2 + $0x268] sm:$0xff] }
 0x17c   : > { %v1279_v23 = vmax.f32 %v1008_v8, 0.0  ;;  %v1233_v32 = vmax.f32 %v1133_v14, 0.0  ;;  %v420_v14 = vld [vmem:[#allocation2 + $0x138] sm:$0xff] }
 0x17d   : > { %v1138_v19 = vpop.f32.mrb[40].mxu1  ;;  %4622 = vmatprep.subr.bf16.mxu1 %v4621_v9  ;;  %v1013_v20 = vpop.f32.mrb[40].mxu0  ;;  %4634 = vmatprep.subr.bf16.mxu0 %v4633_v29  ;;  %v1280_v28 = vmax.f32 %v1010_v12, 0.0  ;;  %v1234_v36 = vmax.f32 %v1135_v18, 0.0  ;;  %v419_v9 = vld [vmem:[#allocation2 + $0x130] sm:$0xff] }
 0x17e   : > { %v1139_v21 = vadd.f32 %v1138_v19, %v395_v11  ;;  %v1140_v22 = vpop.f32.mrb[41].mxu1  ;;  %4624 = vmatpush1.bf16.msra.mxu1 %v4623_v4  ;;  %v1014_v24 = vadd.f32 %v1013_v20, %v441_v13  ;;  %v1015_v25 = vpop.f32.mrb[41].mxu0  ;;  %4636 = vmatpush1.bf16.msra.mxu0 %v4635_v7  ;;  %v466_v7 = vld [vmem:[#allocation2 + $0x2a8] sm:$0xff] }
 0x17f   : > { %v1141_v26 = vadd.f32 %v1140_v22, %v396_v16  ;;  %v1016_v30 = vadd.f32 %v1015_v25, %v442_v17 }
 0x180   : > { %v1241_v33 = vmax.f32 %v1139_v21, 0.0  ;;  %v1287_v34 = vmax.f32 %v1014_v24, 0.0  ;;  %v427_v21 = vld [vmem:[#allocation2 + $0x170] sm:$0xff]  ;;  %v473_v24 = vld [vmem:[#allocation2 + $0x2e0] sm:$0xff] }
 0x181   : > { %v1242_v37 = vmax.f32 %v1141_v26, 0.0  ;;  %v1144_v39 = vpop.f32.mrb[42].mxu1  ;;  %1498 = vmatmul.mubr.f32.vlgmr.msra.gmra.mrb[70].mxu1 %v5626_v5  ;;  %v1288_v40 = vmax.f32 %v1016_v30, 0.0  ;;  %v1019_v41 = vpop.f32.mrb[42].mxu0  ;;  %v428_v26 = vld [vmem:[#allocation2 + $0x178] sm:$0xff] }
 0x182   : > { %v4659_v42 = vpack.c.bf16 %v1241_v33, %v1233_v32  ;;  %v1146_v44 = vpop.f32.mrb[43].mxu1  ;;  %v4639_v45 = vpack.c.bf16 %v1287_v34, %v1279_v23  ;;  %v1020_v46 = vadd.f32 %v1019_v41, %v449_v31  ;;  %v1021_v47 = vpop.f32.mrb[43].mxu0  ;;  %1639 = vmatprep.mubr.f32.mxu1 %v5144_v0  ;;  %v1145_v53 = vadd.f32 %v1144_v39, %v403_v38  ;;  %v481_v41 = vld [vmem:[#allocation2 + $0x320] sm:$0xff] }
 0x183   : > { %v4657_v48 = vpack.c.bf16 %v1242_v37, %v1234_v36  ;;  %v4637_v50 = vpack.c.bf16 %v1288_v40, %v1280_v28  ;;  %v1022_v51 = vadd.f32 %v1021_v47, %v450_v35  ;;  %v1147_v56 = vadd.f32 %v1146_v44, %v404_v43  ;;  %v474_v28 = vld [vmem:[#allocation2 + $0x2e8] sm:$0xff] }
 0x184   : > { %v1295_v61 = vmax.f32 %v1020_v46, 0.0  ;;  %v1249_v4 = vmax.f32 %v1145_v53, 0.0  ;;  %v436_v53 = vld [vmem:[#allocation2 + $0x1b8] sm:$0xff] }
 0x185   : > { %v1150_v57 = vpop.f32.mrb[44].mxu1  ;;  %4658 = vmatprep.subr.bf16.mxu1 %v4657_v48  ;;  %v1025_v58 = vpop.f32.mrb[44].mxu0  ;;  %4638 = vmatprep.subr.bf16.mxu0 %v4637_v50  ;;  %v1296_v1 = vmax.f32 %v1022_v51, 0.0  ;;  %v1250_v8 = vmax.f32 %v1147_v56, 0.0  ;;  %v435_v48 = vld [vmem:[#allocation2 + $0x1b0] sm:$0xff] }
 0x186   : > { %v1151_v59 = vadd.f32 %v1150_v57, %v411_v49  ;;  %v1152_v60 = vpop.f32.mrb[45].mxu1  ;;  %4660 = vmatpush1.bf16.msra.mxu1 %v4659_v42  ;;  %v1026_v15 = vadd.f32 %v1025_v58, %v457_v52  ;;  %v1027_v62 = vpop.f32.mrb[45].mxu0  ;;  %4640 = vmatpush1.bf16.msra.mxu0 %v4639_v45  ;;  %v482_v45 = vld [vmem:[#allocation2 + $0x328] sm:$0xff] }
 0x187   : > { %v1153_v63 = vadd.f32 %v1152_v60, %v412_v54  ;;  %v1028_v2 = vadd.f32 %v1027_v62, %v458_v55 }
 0x188   : > { %v1257_v27 = vmax.f32 %v1151_v59, 0.0  ;;  %v1303_v6 = vmax.f32 %v1026_v15, 0.0  ;;  %v443_v59 = vld [vmem:[#allocation2 + $0x1f0] sm:$0xff]  ;;  %v489_v15 = vld [vmem:[#allocation2 + $0x360] sm:$0xff] }
 0x189   : > { %v1258_v10 = vmax.f32 %v1153_v63, 0.0  ;;  %v1156_v11 = vpop.f32.mrb[46].mxu1  ;;  %v1304_v29 = vmax.f32 %v1028_v2, 0.0  ;;  %v1031_v12 = vpop.f32.mrb[46].mxu0  ;;  %v444_v63 = vld [vmem:[#allocation2 + $0x1f8] sm:$0xff] }
 0x18a   : > { %v4663_v13 = vpack.c.bf16 %v1257_v27, %v1249_v4  ;;  %v1158_v16 = vpop.f32.mrb[47].mxu1  ;;  %v4643_v17 = vpack.c.bf16 %v1303_v6, %v1295_v61  ;;  %v1032_v18 = vadd.f32 %v1031_v12, %v465_v3  ;;  %v1033_v19 = vpop.f32.mrb[47].mxu0  ;;  %v1157_v25 = vadd.f32 %v1156_v11, %v419_v9  ;;  %v497_v12 = vld [vmem:[#allocation2 + $0x3a0] sm:$0xff] }
 0x18b   : > { %v4661_v20 = vpack.c.bf16 %v1258_v10, %v1250_v8  ;;  %v4641_v22 = vpack.c.bf16 %v1304_v29, %v1296_v1  ;;  %v1034_v23 = vadd.f32 %v1033_v19, %v466_v7  ;;  %v1159_v30 = vadd.f32 %v1158_v16, %v420_v14  ;;  %v490_v1 = vld [vmem:[#allocation2 + $0x368] sm:$0xff] }
 0x18c   : > { %v1311_v35 = vmax.f32 %v1032_v18, 0.0  ;;  %v1265_v42 = vmax.f32 %v1157_v25, 0.0 }
 0x18d   : > { %v1162_v31 = vpop.f32.mrb[48].mxu1  ;;  %4662 = vmatprep.subr.bf16.mxu1 %v4661_v20  ;;  %v1037_v32 = vpop.f32.mrb[48].mxu0  ;;  %4642 = vmatprep.subr.bf16.mxu0 %v4641_v22  ;;  %v1312_v39 = vmax.f32 %v1034_v23, 0.0  ;;  %v1266_v46 = vmax.f32 %v1159_v30, 0.0  ;;  %v451_v20 = vld [vmem:[#allocation2 + $0x230] sm:$0xff] }
 0x18e   : > { %v1163_v33 = vadd.f32 %v1162_v31, %v427_v21  ;;  %v1164_v34 = vpop.f32.mrb[49].mxu1  ;;  %4664 = vmatpush1.bf16.msra.mxu1 %v4663_v13  ;;  %v1038_v36 = vadd.f32 %v1037_v32, %v473_v24  ;;  %v1039_v37 = vpop.f32.mrb[49].mxu0  ;;  %4644 = vmatpush1.bf16.msra.mxu0 %v4643_v17  ;;  %v498_v17 = vld [vmem:[#allocation2 + $0x3a8] sm:$0xff] }
 0x18f   : > { %v1165_v38 = vadd.f32 %v1164_v34, %v428_v26  ;;  %v1040_v40 = vadd.f32 %v1039_v37, %v474_v28  ;;  %v452_v26 = vld [vmem:[#allocation2 + $0x238] sm:$0xff] }
 0x190   : > { %v1273_v43 = vmax.f32 %v1163_v33, 0.0  ;;  %v1319_v44 = vmax.f32 %v1038_v36, 0.0  ;;  %v459_v36 = vld [vmem:[#allocation2 + $0x270] sm:$0xff] }
 0x191   : > { %v1274_v47 = vmax.f32 %v1165_v38, 0.0  ;;  %v1168_v49 = vpop.f32.mrb[50].mxu1  ;;  %v1320_v50 = vmax.f32 %v1040_v40, 0.0  ;;  %v1043_v51 = vpop.f32.mrb[50].mxu0  ;;  %v506_v38 = vld [vmem:[#allocation2 + $0x3e8] sm:$0xff] }
 0x192   : > { %v4667_v52 = vpack.c.bf16 %v1273_v43, %v1265_v42  ;;  %v1170_v54 = vpop.f32.mrb[51].mxu1  ;;  %v4647_v55 = vpack.c.bf16 %v1319_v44, %v1311_v35  ;;  %v1044_v56 = vadd.f32 %v1043_v51, %v481_v41  ;;  %v1045_v57 = vpop.f32.mrb[51].mxu0  ;;  %v1169_v62 = vadd.f32 %v1168_v49, %v435_v48  ;;  %v505_v35 = vld [vmem:[#allocation2 + $0x3e0] sm:$0xff] }
 0x193   : > { %v4665_v58 = vpack.c.bf16 %v1274_v47, %v1266_v46  ;;  %v4645_v60 = vpack.c.bf16 %v1320_v50, %v1312_v39  ;;  %v1046_v61 = vadd.f32 %v1045_v57, %v482_v45  ;;  %v1171_v2 = vadd.f32 %v1170_v54, %v436_v53  ;;  %v460_v39 = vld [vmem:[#allocation2 + $0x278] sm:$0xff]  ;;  %v467_v57 = vld [vmem:[#allocation2 + $0x2b0] sm:$0xff] }
 0x194   : > { %v1327_v7 = vmax.f32 %v1044_v56, 0.0  ;;  %v1281_v13 = vmax.f32 %v1169_v62, 0.0 }
 0x195   : > { %v1174_v3 = vpop.f32.mrb[52].mxu1  ;;  %4666 = vmatprep.subr.bf16.mxu1 %v4665_v58  ;;  %v1049_v4 = vpop.f32.mrb[52].mxu0  ;;  %4646 = vmatprep.subr.bf16.mxu0 %v4645_v60  ;;  %v1328_v11 = vmax.f32 %v1046_v61, 0.0  ;;  %v1282_v18 = vmax.f32 %v1171_v2, 0.0  ;;  %v468_v61 = vld [vmem:[#allocation2 + $0x2b8] sm:$0xff] }
 0x196   : > { %v1175_v27 = vadd.f32 %v1174_v3, %v443_v59  ;;  %v1176_v6 = vpop.f32.mrb[53].mxu1  ;;  %4668 = vmatpush1.bf16.msra.mxu1 %v4667_v52  ;;  %v1050_v8 = vadd.f32 %v1049_v4, %v489_v15  ;;  %v1051_v10 = vpop.f32.mrb[53].mxu0  ;;  %4648 = vmatpush1.bf16.msra.mxu0 %v4647_v55  ;;  %v476_v3 = vld [vmem:[#allocation2 + $0x2f8] sm:$0xff] }
 0x197   : > { %v1177_v9 = vadd.f32 %v1176_v6, %v444_v63  ;;  %v1052_v29 = vadd.f32 %v1051_v10, %v490_v1  ;;  %v475_v1 = vld [vmem:[#allocation2 + $0x2f0] sm:$0xff] }
 0x198   : > { %v1289_v14 = vmax.f32 %v1175_v27, 0.0  ;;  %v1335_v16 = vmax.f32 %v1050_v8, 0.0 }
 0x199   : > { %v1290_v19 = vmax.f32 %v1177_v9, 0.0  ;;  %v1180_v21 = vpop.f32.mrb[54].mxu1  ;;  %v1336_v22 = vmax.f32 %v1052_v29, 0.0  ;;  %v1055_v23 = vpop.f32.mrb[54].mxu0 }
 0x19a   : > { %v4671_v24 = vpack.c.bf16 %v1289_v14, %v1281_v13  ;;  %v4651_v25 = vpack.c.bf16 %v1335_v16, %v1327_v7  ;;  %v1182_v28 = vpop.f32.mrb[55].mxu1  ;;  %v1056_v30 = vadd.f32 %v1055_v23, %v497_v12  ;;  %v1057_v31 = vpop.f32.mrb[55].mxu0  ;;  %v1181_v37 = vadd.f32 %v1180_v21, %v451_v20  ;;  %v483_v12 = vld [vmem:[#allocation2 + $0x330] sm:$0xff]  ;;  %v484_v16 = vld [vmem:[#allocation2 + $0x338] sm:$0xff] }
 0x19b   : > { %v4669_v32 = vpack.c.bf16 %v1290_v19, %v1282_v18  ;;  %v4649_v33 = vpack.c.bf16 %v1336_v22, %v1328_v11  ;;  %v1058_v34 = vadd.f32 %v1057_v31, %v498_v17  ;;  %v1183_v40 = vadd.f32 %v1182_v28, %v452_v26  ;;  %v491_v19 = vld [vmem:[#allocation2 + $0x370] sm:$0xff]  ;;  %v492_v21 = vld [vmem:[#allocation2 + $0x378] sm:$0xff] }
 0x19c   : > { %v1343_v43 = vmax.f32 %v1056_v30, 0.0  ;;  %v1297_v51 = vmax.f32 %v1181_v37, 0.0 }
 0x19d   : > { %v1061_v41 = vpop.f32.mrb[56].mxu0  ;;  %v1186_v42 = vpop.f32.mrb[56].mxu1  ;;  %4670 = vmatprep.subr.bf16.mxu1 %v4669_v32  ;;  %4650 = vmatprep.subr.bf16.mxu0 %v4649_v33  ;;  %v1344_v48 = vmax.f32 %v1058_v34, 0.0  ;;  %v1298_v54 = vmax.f32 %v1183_v40, 0.0  ;;  %v499_v33 = vld [vmem:[#allocation2 + $0x3b0] sm:$0xff] }
 0x19e   : > { %v1062_v44 = vadd.f32 %v1061_v41, %v505_v35  ;;  %v1187_v45 = vadd.f32 %v1186_v42, %v459_v36  ;;  %v1063_v46 = vpop.f32.mrb[57].mxu0  ;;  %v1188_v47 = vpop.f32.mrb[57].mxu1  ;;  %4672 = vmatpush1.bf16.msra.mxu1 %v4671_v24  ;;  %4652 = vmatpush1.bf16.msra.mxu0 %v4651_v25  ;;  %v500_v36 = vld [vmem:[#allocation2 + $0x3b8] sm:$0xff] }
 0x19f   : > { %v1064_v49 = vadd.f32 %v1063_v46, %v506_v38  ;;  %v1189_v50 = vadd.f32 %v1188_v47, %v460_v39  ;;  %v507_v39 = vld [vmem:[#allocation2 + $0x3f0] sm:$0xff]  ;;  %v508_v41 = vld [vmem:[#allocation2 + $0x3f8] sm:$0xff] }
 0x1a0   : > { %v1351_v52 = vmax.f32 %v1062_v44, 0.0  ;;  %v1305_v53 = vmax.f32 %v1187_v45, 0.0 }
 0x1a1   : > { %v1352_v55 = vmax.f32 %v1064_v49, 0.0  ;;  %v1306_v56 = vmax.f32 %v1189_v50, 0.0  ;;  %v1192_v58 = vpop.f32.mrb[58].mxu1 }
 0x1a2   : > { %v4655_v59 = vpack.c.bf16 %v1351_v52, %v1343_v43  ;;  %v4675_v60 = vpack.c.bf16 %v1305_v53, %v1297_v51  ;;  %v1194_v15 = vpop.f32.mrb[59].mxu1  ;;  %v1193_v2 = vadd.f32 %v1192_v58, %v467_v57  ;;  %v4787_v53 = vld [vmem:[#allocation5 + $0x40] sm:$0xff]   ;;  %v4791_v57 = vld [vmem:[#allocation5 + $0x50] sm:$0xff]  }
 0x1a3   : > { %v4653_v62 = vpack.c.bf16 %v1352_v55, %v1344_v48  ;;  %v4673_v63 = vpack.c.bf16 %v1306_v56, %v1298_v54  ;;  %v1195_v4 = vadd.f32 %v1194_v15, %v468_v61  ;;  %v4788_v54 = vld [vmem:[#allocation5] sm:$0xff]   ;;  %v4789_v55 = vld [vmem:[#allocation5 + $0x48] sm:$0xff]   ;;  %v4792_v58 = vld [vmem:[#allocation5 + $0x10] sm:$0xff]  }
 0x1a4   : > { %v1313_v10 = vmax.f32 %v1193_v2, 0.0  ;;  %v4790_v56 = vld [vmem:[#allocation5 + $0x8] sm:$0xff]   ;;  %v4795_v61 = vld [vmem:[#allocation5 + $0x60] sm:$0xff]   ;;  %v4801_v2 = vld [vmem:[#allocation5 + $0x70] sm:$0xff]  }
 0x1a5   : > { %v1198_v27 = vpop.f32.mrb[60].mxu1  ;;  %4654 = vmatprep.subr.bf16.mxu0 %v4653_v62  ;;  %4674 = vmatprep.subr.bf16.mxu1 %v4673_v63  ;;  %v1314_v11 = vmax.f32 %v1195_v4, 0.0  ;;  %v4796_v15 = vld [vmem:[#allocation5 + $0x20] sm:$0xff]   ;;  %v4799_v63 = vld [vmem:[#allocation5 + $0x28] sm:$0xff]   ;;  %v4803_v4 = vld [vmem:[#allocation5 + $0x30] sm:$0xff]  }
 0x1a6   : > { %v1199_v6 = vadd.f32 %v1198_v27, %v475_v1  ;;  %v1200_v7 = vpop.f32.mrb[61].mxu1  ;;  %4656 = vmatpush1.bf16.msra.mxu0 %v4655_v59  ;;  %4676 = vmatpush1.bf16.msra.mxu1 %v4675_v60  ;;  %v4793_v59 = vld [vmem:[#allocation5 + $0x58] sm:$0xff]   ;;  %v4798_v62 = vld [vmem:[#allocation5 + $0xc0] sm:$0xff]   ;;  %v4804_v27 = vld [vmem:[#allocation5 + $0x88] sm:$0xff]  }
 0x1a7   : > { %v1201_v8 = vadd.f32 %v1200_v7, %v476_v3  ;;  %4245 = vmatprep.subr.bf16.mxu0 %v4787_v53  ;;  %v4794_v60 = vld [vmem:[#allocation5 + $0x18] sm:$0xff]   ;;  %v4800_v1 = vld [vmem:[#allocation5 + $0x80] sm:$0xff]   ;;  %v4802_v3 = vld [vmem:[#allocation5 + $0xc8] sm:$0xff]  }
 0x1a8   : > { %v1321_v9 = vmax.f32 %v1199_v6, 0.0  ;;  %v4805_v6 = vld [vmem:[#allocation5 + $0x78] sm:$0xff]   ;;  %v4806_v7 = vld [vmem:[#allocation5 + $0xd0] sm:$0xff]  }
 0x1a9   : > { %v1322_v29 = vmax.f32 %v1201_v8, 0.0  ;;  %v1204_v13 = vpop.f32.mrb[62].mxu1  ;;  %1569 = vmatmul.mubr.f32.vlgmr.msra.gmra.mrb[60].mxu0 %v5626_v5  ;;  %v4807_v8 = vld [vmem:[#allocation5 + $0x38] sm:$0xff]   ;;  %v4820_v53 = vld [vmem:[#allocation5 + $0x110] sm:$0xff]  }
 0x1aa   : > { %v4679_v14 = vpack.c.bf16 %v1321_v9, %v1313_v10  ;;  %v1206_v17 = vpop.f32.mrb[63].mxu1  ;;  %v1205_v20 = vadd.f32 %v1204_v13, %v483_v12  ;;  %4246 = vmatpush3.bf16.msra.mxu0 %v4788_v54  ;;  %v4808_v10 = vld [vmem:[#allocation5 + $0x90] sm:$0xff]   ;;  %v4809_v9 = vld [vmem:[#allocation5 + $0xd8] sm:$0xff]   ;;  %v4813_v12 = vld [vmem:[#allocation5 + $0xe0] sm:$0xff]  }
 0x1ab   : > { %v4677_v18 = vpack.c.bf16 %v1322_v29, %v1314_v11  ;;  %v1207_v22 = vadd.f32 %v1206_v17, %v484_v16  ;;  %4247 = vmatprep.subr.bf16.mxu0 %v4789_v55  ;;  %v4810_v11 = vld [vmem:[#allocation5 + $0x140] sm:$0xff]   ;;  %v4811_v29 = vld [vmem:[#allocation5 + $0x98] sm:$0xff]   ;;  %v4819_v16 = vld [vmem:[#allocation5 + $0xa8] sm:$0xff]  }
 0x1ac   : > { %v1329_v28 = vmax.f32 %v1205_v20, 0.0  ;;  %v4815_v13 = vld [vmem:[#allocation5 + $0xa0] sm:$0xff]   ;;  %v4821_v17 = vld [vmem:[#allocation5 + $0xf0] sm:$0xff]   ;;  %v4827_v20 = vld [vmem:[#allocation5 + $0xb8] sm:$0xff]  }
 0x1ad   : > { %v1210_v23 = vpop.f32.mrb[64].mxu1  ;;  %4678 = vmatprep.subr.bf16.mxu1 %v4677_v18  ;;  %v1330_v31 = vmax.f32 %v1207_v22, 0.0  ;;  %v4823_v18 = vld [vmem:[#allocation5 + $0xb0] sm:$0xff]   ;;  %v4822_v54 = vld [vmem:[#allocation5 + $0x158] sm:$0xff]  }
 0x1ae   : > { %v1211_v24 = vadd.f32 %v1210_v23, %v491_v19  ;;  %v1212_v25 = vpop.f32.mrb[65].mxu1  ;;  %4680 = vmatpush1.bf16.msra.mxu1 %v4679_v14  ;;  %4248 = vmatpush3.bf16.msra.mxu0 %v4790_v56  ;;  %v4817_v14 = vld [vmem:[#allocation5 + $0xe8] sm:$0xff]   ;;  %v4825_v19 = vld [vmem:[#allocation5 + $0xf8] sm:$0xff]   ;;  %v4826_v56 = vld [vmem:[#allocation5 + $0x160] sm:$0xff]  }
 0x1af   : > { %v1213_v26 = vadd.f32 %v1212_v25, %v492_v21  ;;  %4249 = vmatprep.subr.bf16.mxu0 %v4791_v57  ;;  %v4832_v21 = vld [vmem:[#allocation5 + $0x1c0] sm:$0xff]   ;;  %v4824_v55 = vld [vmem:[#allocation5 + $0x118] sm:$0xff]  }
 0x1b0   : > { %v1337_v30 = vmax.f32 %v1211_v24, 0.0  ;;  %v4828_v57 = vld [vmem:[#allocation5 + $0x120] sm:$0xff]  }
 0x1b1   : > { %v1338_v32 = vmax.f32 %v1213_v26, 0.0  ;;  %v1216_v34 = vpop.f32.mrb[66].mxu1 }
 0x1b2   : > { %v4683_v35 = vpack.c.bf16 %v1337_v30, %v1329_v28  ;;  %v1218_v37 = vpop.f32.mrb[67].mxu1  ;;  %v1217_v40 = vadd.f32 %v1216_v34, %v499_v33  ;;  %4250 = vmatpush3.bf16.msra.mxu0 %v4792_v58 }
 0x1b3   : > { %v4681_v38 = vpack.c.bf16 %v1338_v32, %v1330_v31  ;;  %v1219_v42 = vadd.f32 %v1218_v37, %v500_v36  ;;  %4251 = vmatprep.subr.bf16.mxu0 %v4793_v59  ;;  %v4829_v59 = vld [vmem:[#allocation5 + $0x168] sm:$0xff]  }
 0x1b4   : > { %v1345_v47 = vmax.f32 %v1217_v40, 0.0 }
 0x1b5   : > { %v1222_v43 = vpop.f32.mrb[68].mxu1  ;;  %4682 = vmatprep.subr.bf16.mxu1 %v4681_v38  ;;  %v1346_v49 = vmax.f32 %v1219_v42, 0.0 }
 0x1b6   : > { %v1223_v44 = vadd.f32 %v1222_v43, %v507_v39  ;;  %v1224_v45 = vpop.f32.mrb[69].mxu1  ;;  %4684 = vmatpush1.bf16.msra.mxu1 %v4683_v35  ;;  %4252 = vmatpush3.bf16.msra.mxu0 %v4794_v60 }
 0x1b7   : > { %v1225_v46 = vadd.f32 %v1224_v45, %v508_v41  ;;  %4253 = vmatprep.subr.bf16.mxu0 %v4795_v61  ;;  %v4812_v45 = vld [vmem:[#allocation5 + $0x100] sm:$0xff]  }
 0x1b8   : > { %v1353_v48 = vmax.f32 %v1223_v44, 0.0  ;;  %v5634_v22 = vpop.permute.xlu0 %1359 }
 0x1b9   : > { %v1354_v50 = vmax.f32 %v1225_v46, 0.0  ;;  %v4814_v46 = vld [vmem:[#allocation5 + $0x148] sm:$0xff]  }
 0x1ba   : > { %v4687_v51 = vpack.c.bf16 %v1353_v48, %v1345_v47  ;;  %4254 = vmatpush3.bf16.msra.mxu0 %v4796_v15  ;;  %v4816_v48 = vld [vmem:[#allocation5 + $0x108] sm:$0xff]  }
 0x1bb   : > { %v4685_v52 = vpack.c.bf16 %v1354_v50, %v1346_v49 }
 0x1bd   : > { %4686 = vmatprep.subr.bf16.mxu1 %v4685_v52 }
 0x1be   : > { %4688 = vmatpush1.bf16.msra.mxu1 %v4687_v51  ;;  %v4818_v51 = vld [vmem:[#allocation5 + $0x150] sm:$0xff]  }
 0x1bf   : > { %4267 = vmatprep.subr.bf16.mxu1 %v4798_v62  ;;  %v4830_v62 = vld [vmem:[#allocation5 + $0x128] sm:$0xff]  }
 0x1c1   : > { %1640 = vmatmul.mubr.f32.vlgmr.msra.gmra.mrb[72].mxu1 %v5626_v5  ;;  %v4797_v5 = vld [vmem:[#allocation5 + $0x68] sm:$0xff]  }
 0x1c2   : > { %4255 = vmatprep.subr.bf16.mxu0 %v4797_v5  ;;  %4268 = vmatpush3.bf16.msra.mxu1 %v4800_v1  ;;  %v4834_v5 = vld [vmem:[#allocation5 + $0x180] sm:$0xff]   ;;  %v4831_v1 = vld [vmem:[#allocation5 + $0x170] sm:$0xff]  }
 0x1c3   : > { %4256 = vmatpush3.bf16.msra.mxu0 %v4799_v63  ;;  %4269 = vmatprep.subr.bf16.mxu1 %v4802_v3  ;;  %v4836_v63 = vld [vmem:[#allocation5 + $0x1c8] sm:$0xff]   ;;  %v4833_v3 = vld [vmem:[#allocation5 + $0x130] sm:$0xff]  }
 0x1c4   : > { %4257 = vmatprep.subr.bf16.mxu0 %v4801_v2  ;;  %v4838_v2 = vld [vmem:[#allocation5 + $0x188] sm:$0xff]  }
 0x1c6   : > { %4270 = vmatpush3.bf16.msra.mxu1 %v4804_v27  ;;  %v4835_v27 = vld [vmem:[#allocation5 + $0x178] sm:$0xff]  }
 0x1c7   : > { %4258 = vmatpush3.bf16.msra.mxu0 %v4803_v4  ;;  %4271 = vmatprep.subr.bf16.mxu1 %v4806_v7  ;;  %v4839_v4 = vld [vmem:[#allocation5 + $0x1d0] sm:$0xff]   ;;  %v4837_v7 = vld [vmem:[#allocation5 + $0x138] sm:$0xff]  }
 0x1c8   : > { %4259 = vmatprep.subr.bf16.mxu0 %v4805_v6  ;;  %v4841_v6 = vld [vmem:[#allocation5 + $0x190] sm:$0xff]  }
 0x1ca   : > { %4272 = vmatpush3.bf16.msra.mxu1 %v4808_v10 }
 0x1cb   : > { %4260 = vmatpush3.bf16.msra.mxu0 %v4807_v8  ;;  %4273 = vmatprep.subr.bf16.mxu1 %v4809_v9  ;;  %v4843_v8 = vld [vmem:[#allocation5 + $0x1d8] sm:$0xff]   ;;  %v4840_v9 = vld [vmem:[#allocation5 + $0x240] sm:$0xff]  }
 0x1cc   : > { %4289 = vmatprep.subr.bf16.mxu0 %v4810_v11 }
 0x1ce   : > { %4274 = vmatpush3.bf16.msra.mxu1 %v4811_v29 }
 0x1cf   : > { %4275 = vmatprep.subr.bf16.mxu1 %v4813_v12 }
 0x1d2   : > { %4276 = vmatpush3.bf16.msra.mxu1 %v4815_v13  ;;  %v4845_v13 = vld [vmem:[#allocation5 + $0x198] sm:$0xff]  }
 0x1d3   : > { %4277 = vmatprep.subr.bf16.mxu1 %v4817_v14 }
 0x1d6   : > { %4278 = vmatpush3.bf16.msra.mxu1 %v4819_v16  ;;  %v4847_v16 = vld [vmem:[#allocation5 + $0x1e0] sm:$0xff]  }
 0x1d7   : > { %4279 = vmatprep.subr.bf16.mxu1 %v4821_v17 }
 0x1da   : > { %4280 = vmatpush3.bf16.msra.mxu1 %v4823_v18  ;;  %v4849_v18 = vld [vmem:[#allocation5 + $0x1a0] sm:$0xff]  }
 0x1db   : > { %4281 = vmatprep.subr.bf16.mxu1 %v4825_v19  ;;  %v4851_v19 = vld [vmem:[#allocation5 + $0x1e8] sm:$0xff]  }
 0x1de   : > { %4282 = vmatpush3.bf16.msra.mxu1 %v4827_v20  ;;  %v4853_v20 = vld [vmem:[#allocation5 + $0x1a8] sm:$0xff]  }
 0x1df   : > { %4311 = vmatprep.subr.bf16.mxu1 %v4832_v21  ;;  %v4855_v21 = vld [vmem:[#allocation5 + $0x1f0] sm:$0xff]  }
 0x241   : > { %v1428_v23 = vpop.f32.mrb[58].mxu0 }
 0x242   : > { %v1430_v24 = vpop.f32.mrb[59].mxu0  ;;  %v1429_v25 = vadd.f32 %v1428_v23, %v5634_v22  ;;  %v4857_v23 = vld [vmem:[#allocation5 + $0x1b0] sm:$0xff]  }
 0x243   : > { %v1431_v26 = vadd.f32 %v1430_v24, %v5634_v22 }
 0x244   : > { %v4041_v28 = vmul.f32 -1.442695, %v1429_v25  ;;  %v4859_v25 = vld [vmem:[#allocation5 + $0x1f8] sm:$0xff]  }
 0x245   : > { %v4042_v30 = vmul.f32 -1.442695, %v1431_v26 }
 0x246   : > { %4979 = vpow2.f32 %v4041_v28 }
 0x247   : > { %4981 = vpow2.f32 %v4042_v30 }
 0x250   : > { %v4980_v31 = vpop.eup %4979 }
 0x251   : > { %v4982_v32 = vpop.eup %4981  ;;  %v1670_v33 = vadd.f32 1.0, %v4980_v31  ;;  %v4861_v31 = vld [vmem:[#allocation5 + $0x1b8] sm:$0xff]  }
 0x252   : > { %v1671_v34 = vadd.f32 1.0, %v4982_v32  ;;  %v4864_v32 = vld [vmem:[#allocation5 + $0x2c0] sm:$0xff]  }
 0x253   : > { %4983 = vrcp.f32 %v1670_v33 }
 0x254   : > { %4985 = vrcp.f32 %v1671_v34  ;;  %v1499_v35 = vpop.f32.mrb[70].mxu1 }
 0x255   : > { %v1500_v36 = vadd.f32 %v1499_v35, %v5634_v22  ;;  %v1501_v37 = vpop.f32.mrb[71].mxu1 }
 0x256   : > { %v1502_v38 = vadd.f32 %v1501_v37, %v5634_v22 }
 0x257   : > { %v4043_v39 = vmul.f32 -1.442695, %v1500_v36 }
 0x258   : > { %v4044_v40 = vmul.f32 -1.442695, %v1502_v38 }
 0x259   : > { %4987 = vpow2.f32 %v4043_v39 }
 0x25a   : > { %4989 = vpow2.f32 %v4044_v40 }
 0x25d   : > { %v4984_v41 = vpop.eup %4983 }
 0x25e   : > { %v4986_v42 = vpop.eup %4985  ;;  %v5640_v43 = vpack.c.bf16 %v4984_v41, %v4984_v41 }
 0x25f   : > { %v5642_v44 = vpack.c.bf16 %v4986_v42, %v4986_v42  ;;  %v4842_v42 = vld [vmem:[#allocation5 + $0x200] sm:$0xff]  }
 0x261   : > { %2247 = vmatprep.mubr.bf16.mxu0 %v5642_v44 }
 0x262   : > { %2248 = vmatmul.mubr.bf16.vlgmr.msra.gmra.mrb[64].mxu0 %v5640_v43 }
 0x263   : > { %v4988_v47 = vpop.eup %4987  ;;  %4290 = vmatpush3.bf16.msra.mxu0 %v4812_v45 }
 0x264   : > { %v4990_v49 = vpop.eup %4989  ;;  %v1672_v50 = vadd.f32 1.0, %v4988_v47  ;;  %4291 = vmatprep.subr.bf16.mxu0 %v4814_v46  ;;  %v4844_v46 = vld [vmem:[#allocation5 + $0x248] sm:$0xff]   ;;  %v2509_v47 = vshrl.u32 %v5642_v44, 16 }
 0x265   : > { %v1673_v52 = vadd.f32 1.0, %v4990_v49  ;;  %v4850_v49 = vld [vmem:[#allocation5 + $0x210] sm:$0xff]  }
 0x266   : > { %4991 = vrcp.f32 %v1672_v50 }
 0x267   : > { %4993 = vrcp.f32 %v1673_v52  ;;  %4292 = vmatpush3.bf16.msra.mxu0 %v4816_v48  ;;  %v4848_v48 = vld [vmem:[#allocation5 + $0x250] sm:$0xff]  }
 0x268   : > { %4293 = vmatprep.subr.bf16.mxu0 %v4818_v51  ;;  %v4852_v51 = vld [vmem:[#allocation5 + $0x258] sm:$0xff]  }
 0x26b   : > { %4294 = vmatpush3.bf16.msra.mxu0 %v4820_v53 }
 0x26c   : > { %4295 = vmatprep.subr.bf16.mxu0 %v4822_v54 }
 0x26f   : > { %4296 = vmatpush3.bf16.msra.mxu0 %v4824_v55  ;;  %v4854_v55 = vld [vmem:[#allocation5 + $0x218] sm:$0xff]  }
 0x270   : > { %v4992_v58 = vpop.eup %4991  ;;  %4297 = vmatprep.subr.bf16.mxu0 %v4826_v56  ;;  %v4856_v56 = vld [vmem:[#allocation5 + $0x260] sm:$0xff]  }
 0x271   : > { %v4994_v60 = vpop.eup %4993  ;;  %v5646_v61 = vpack.c.bf16 %v4992_v58, %v4992_v58  ;;  %v4860_v58 = vld [vmem:[#allocation5 + $0x268] sm:$0xff]  }
 0x272   : > { %v5648_v15 = vpack.c.bf16 %v4994_v60, %v4994_v60  ;;  %v4863_v60 = vld [vmem:[#allocation5 + $0x270] sm:$0xff]  }
 0x273   : > { %4298 = vmatpush3.bf16.msra.mxu0 %v4828_v57  ;;  %v4858_v57 = vld [vmem:[#allocation5 + $0x220] sm:$0xff]  }
 0x274   : > { %2287 = vmatprep.mubr.bf16.mxu1 %v5648_v15  ;;  %4299 = vmatprep.subr.bf16.mxu0 %v4829_v59  ;;  %v4862_v59 = vld [vmem:[#allocation5 + $0x228] sm:$0xff]  }
 0x275   : > { %2288 = vmatmul.mubr.bf16.vlgmr.msra.gmra.mrb[76].mxu1 %v5646_v61 }
 0x276   : > { %4312 = vmatpush3.bf16.msra.mxu1 %v4834_v5 }
 0x277   : > { %4300 = vmatpush3.bf16.msra.mxu0 %v4830_v62  ;;  %4313 = vmatprep.subr.bf16.mxu1 %v4836_v63 }
 0x278   : > { %4301 = vmatprep.subr.bf16.mxu0 %v4831_v1  ;;  %v4865_v1 = vld [vmem:[#allocation5 + $0x230] sm:$0xff]  }
 0x27a   : > { %4314 = vmatpush3.bf16.msra.mxu1 %v4838_v2  ;;  %v4866_v2 = vld [vmem:[#allocation5 + $0x280] sm:$0xff]  }
 0x27b   : > { %4302 = vmatpush3.bf16.msra.mxu0 %v4833_v3  ;;  %4315 = vmatprep.subr.bf16.mxu1 %v4839_v4  ;;  %v4867_v4 = vld [vmem:[#allocation5 + $0x278] sm:$0xff]  }
 0x27c   : > { %v1570_v10 = vpop.f32.mrb[60].mxu0  ;;  %4303 = vmatprep.subr.bf16.mxu0 %v4835_v27  ;;  %v4868_v27 = vld [vmem:[#allocation5 + $0x2c8] sm:$0xff]  }
 0x27d   : > { %v1571_v11 = vadd.f32 %v1570_v10, %v5634_v22  ;;  %v1572_v29 = vpop.f32.mrb[61].mxu0  ;;  %v4871_v10 = vld [vmem:[#allocation5 + $0x2d0] sm:$0xff]  }
 0x27e   : > { %v1573_v12 = vadd.f32 %v1572_v29, %v5634_v22  ;;  %4316 = vmatpush3.bf16.msra.mxu1 %v4841_v6  ;;  %v2515_v6 = vshrl.u32 %v5648_v15, 16  ;;  %v4874_v29 = vld [vmem:[#allocation5 + $0x300] sm:$0xff]  }
 0x27f   : > { %v4045_v14 = vmul.f32 -1.442695, %v1571_v11  ;;  %4304 = vmatpush3.bf16.msra.mxu0 %v4837_v7  ;;  %4317 = vmatprep.subr.bf16.mxu1 %v4843_v8  ;;  %v4869_v7 = vld [vmem:[#allocation5 + $0x238] sm:$0xff]   ;;  %v4870_v8 = vld [vmem:[#allocation5 + $0x288] sm:$0xff]   ;;  %v4873_v11 = vld [vmem:[#allocation5 + $0x290] sm:$0xff]  }
 0x280   : > { %v4046_v17 = vmul.f32 -1.442695, %v1573_v12  ;;  %4333 = vmatprep.subr.bf16.mxu0 %v4840_v9  ;;  %v4872_v9 = vld [vmem:[#allocation5 + $0x340] sm:$0xff]   ;;  %v2506_v12 = vshrl.u32 %v5640_v43, 16 }
 0x281   : > { %4995 = vpow2.f32 %v4045_v14  ;;  %v4876_v14 = vld [vmem:[#allocation5 + $0x348] sm:$0xff]  }
 0x282   : > { %4997 = vpow2.f32 %v4046_v17  ;;  %4318 = vmatpush3.bf16.msra.mxu1 %v4845_v13  ;;  %v4875_v13 = vld [vmem:[#allocation5 + $0x2d8] sm:$0xff]  }
 0x283   : > { %4319 = vmatprep.subr.bf16.mxu1 %v4847_v16  ;;  %v4877_v17 = vld [vmem:[#allocation5 + $0x298] sm:$0xff]  }
 0x286   : > { %4320 = vmatpush3.bf16.msra.mxu1 %v4849_v18  ;;  %v4878_v18 = vld [vmem:[#allocation5 + $0x308] sm:$0xff]  }
 0x287   : > { %4321 = vmatprep.subr.bf16.mxu1 %v4851_v19  ;;  %v4879_v19 = vld [vmem:[#allocation5 + $0x2e0] sm:$0xff]  }
 0x28a   : > { %4322 = vmatpush3.bf16.msra.mxu1 %v4853_v20  ;;  %v4880_v20 = vld [vmem:[#allocation5 + $0x350] sm:$0xff]  }
 0x28b   : > { %v4996_v24 = vpop.eup %4995  ;;  %4323 = vmatprep.subr.bf16.mxu1 %v4855_v21  ;;  %v4881_v21 = vld [vmem:[#allocation5 + $0x2a0] sm:$0xff]  }
 0x28c   : > { %v4998_v26 = vpop.eup %4997  ;;  %v1674_v28 = vadd.f32 1.0, %v4996_v24  ;;  %v4883_v24 = vld [vmem:[#allocation5 + $0x2e8] sm:$0xff]  }
 0x28d   : > { %v1675_v30 = vadd.f32 1.0, %v4998_v26  ;;  %v4885_v26 = vld [vmem:[#allocation5 + $0x2a8] sm:$0xff]  }
 0x28e   : > { %4999 = vrcp.f32 %v1674_v28  ;;  %4324 = vmatpush3.bf16.msra.mxu1 %v4857_v23  ;;  %v4882_v23 = vld [vmem:[#allocation5 + $0x310] sm:$0xff]   ;;  %v4886_v28 = vld [vmem:[#allocation5 + $0x318] sm:$0xff]  }
 0x28f   : > { %5001 = vrcp.f32 %v1675_v30  ;;  %4325 = vmatprep.subr.bf16.mxu1 %v4859_v25  ;;  %v4884_v25 = vld [vmem:[#allocation5 + $0x358] sm:$0xff]   ;;  %v4887_v30 = vld [vmem:[#allocation5 + $0x2f0] sm:$0xff]  }
 0x292   : > { %4326 = vmatpush3.bf16.msra.mxu1 %v4861_v31  ;;  %v4888_v31 = vld [vmem:[#allocation5 + $0x360] sm:$0xff]  }
 0x293   : > { %4355 = vmatprep.subr.bf16.mxu1 %v4864_v32  ;;  %v4889_v32 = vld [vmem:[#allocation5 + $0x2b0] sm:$0xff]  }
 0x294   : > { %v1641_v33 = vpop.f32.mrb[72].mxu1 }
 0x295   : > { %v1642_v34 = vadd.f32 %v1641_v33, %v5634_v22  ;;  %v1643_v35 = vpop.f32.mrb[73].mxu1  ;;  %v4890_v33 = vld [vmem:[#allocation5 + $0x320] sm:$0xff]  }
 0x296   : > { %v1644_v36 = vadd.f32 %v1643_v35, %v5634_v22  ;;  %v4846_v22 = vld [vmem:[#allocation5 + $0x208] sm:$0xff]  }
 0x297   : > { %v4047_v37 = vmul.f32 -1.442695, %v1642_v34  ;;  %v4891_v34 = vld [vmem:[#allocation5 + $0x2f8] sm:$0xff]   ;;  %v4892_v35 = vld [vmem:[#allocation5 + $0x368] sm:$0xff]  }
 0x298   : > { %v5000_v38 = vpop.eup %4999  ;;  %v4048_v39 = vmul.f32 -1.442695, %v1644_v36  ;;  %v4893_v36 = vld [vmem:[#allocation5 + $0x2b8] sm:$0xff]  }
 0x299   : > { %v5002_v40 = vpop.eup %5001  ;;  %5003 = vpow2.f32 %v4047_v37  ;;  %v5658_v45 = vpack.c.bf16 %v5000_v38, %v5000_v38  ;;  %v4894_v37 = vld [vmem:[#allocation5 + $0x328] sm:$0xff]   ;;  %v4895_v38 = vld [vmem:[#allocation5 + $0x370] sm:$0xff]  }
 0x29a   : > { %5005 = vpow2.f32 %v4048_v39  ;;  %v5656_v41 = vpack.c.bf16 %v5002_v40, %v5002_v40  ;;  %v4896_v39 = vld [vmem:[#allocation5 + $0x3c0] sm:$0xff]   ;;  %v4897_v40 = vld [vmem:[#allocation5 + $0x330] sm:$0xff]  }
 0x29c   : > { %2327 = vmatprep.mubr.bf16.mxu0 %v5656_v41  ;;  %v2521_v16 = vshrl.u32 %v5656_v41, 16 }
 0x29d   : > { %2328 = vmatmul.mubr.bf16.vlgmr.msra.gmra.mrb[68].mxu0 %v5658_v45 }
 0x29e   : > { %4334 = vmatpush3.bf16.msra.mxu0 %v4842_v42  ;;  %2953 = vmatprep.mubr.bf16.mxu0 %v2509_v47  ;;  %v4898_v42 = vld [vmem:[#allocation5 + $0x380] sm:$0xff]   ;;  %v4899_v47 = vld [vmem:[#allocation5 + $0x378] sm:$0xff]  }
 0x29f   : > { %4335 = vmatprep.subr.bf16.mxu0 %v4844_v46  ;;  %v2512_v46 = vshrl.u32 %v5646_v61, 16 }
 0x2a2   : > { %4336 = vmatpush3.bf16.msra.mxu0 %v4846_v22  ;;  %v4900_v22 = vld [vmem:[#allocation5 + $0x3c8] sm:$0xff]  }
 0x2a3   : > { %v5004_v50 = vpop.eup %5003  ;;  %4337 = vmatprep.subr.bf16.mxu0 %v4848_v48 }
 0x2a4   : > { %v5006_v52 = vpop.eup %5005  ;;  %v1676_v53 = vadd.f32 1.0, %v5004_v50  ;;  %v4902_v50 = vld [vmem:[#allocation5 + $0x388] sm:$0xff]  }
 0x2a5   : > { %v1677_v54 = vadd.f32 1.0, %v5006_v52  ;;  %v4904_v52 = vld [vmem:[#allocation5 + $0x440] sm:$0xff]  }
 0x2a6   : > { %5007 = vrcp.f32 %v1676_v53  ;;  %4338 = vmatpush3.bf16.msra.mxu0 %v4850_v49  ;;  %v4901_v49 = vld [vmem:[#allocation5 + $0x338] sm:$0xff]   ;;  %v4905_v53 = vld [vmem:[#allocation5 + $0x390] sm:$0xff]  }
 0x2a7   : > { %5009 = vrcp.f32 %v1677_v54  ;;  %4339 = vmatprep.subr.bf16.mxu0 %v4852_v51  ;;  %v4903_v51 = vld [vmem:[#allocation5 + $0x3d0] sm:$0xff]   ;;  %v4906_v54 = vld [vmem:[#allocation5 + $0x400] sm:$0xff]  }
 0x2aa   : > { %4340 = vmatpush3.bf16.msra.mxu0 %v4854_v55  ;;  %v2518_v55 = vshrl.u32 %v5658_v45, 16 }
 0x2ab   : > { %4341 = vmatprep.subr.bf16.mxu0 %v4856_v56  ;;  %v4907_v56 = vld [vmem:[#allocation5 + $0x3d8] sm:$0xff]  }
 0x2ae   : > { %4342 = vmatpush3.bf16.msra.mxu0 %v4858_v57  ;;  %v4908_v57 = vld [vmem:[#allocation5 + $0x448] sm:$0xff]  }
 0x2af   : > { %4343 = vmatprep.subr.bf16.mxu0 %v4860_v58  ;;  %v3220_v58 = vrot.slane %v5642_v44, 1  ;;  %v4917_v44 = vld [vmem:[#allocation5 + $0x3a8] sm:$0xff]  }
 0x2b0   : > { %v5008_v5 = vpop.eup %5007 }
 0x2b1   : > { %v5010_v62 = vpop.eup %5009  ;;  %v5665_v3 = vpack.c.bf16 %v5008_v5, %v5008_v5  ;;  %v4911_v5 = vld [vmem:[#allocation5 + $0x3e0] sm:$0xff]  }
 0x2b2   : > { %4344 = vmatpush3.bf16.msra.mxu0 %v4862_v59  ;;  %v5663_v63 = vpack.c.bf16 %v5010_v62, %v5010_v62  ;;  %v4909_v59 = vld [vmem:[#allocation5 + $0x398] sm:$0xff]   ;;  %v4912_v62 = vld [vmem:[#allocation5 + $0x450] sm:$0xff]  }
 0x2b3   : > { %4345 = vmatprep.subr.bf16.mxu0 %v4863_v60  ;;  %v4910_v60 = vld [vmem:[#allocation5 + $0x408] sm:$0xff]  }
 0x2b4   : > { %2367 = vmatprep.mubr.bf16.mxu1 %v5663_v63  ;;  %v2527_v48 = vshrl.u32 %v5663_v63, 16 }
 0x2b5   : > { %2368 = vmatmul.mubr.bf16.vlgmr.msra.gmra.mrb[80].mxu1 %v5665_v3 }
 0x2b6   : > { %4346 = vmatpush3.bf16.msra.mxu0 %v4865_v1  ;;  %4356 = vmatpush3.bf16.msra.mxu1 %v4866_v2  ;;  %v4913_v1 = vld [vmem:[#allocation5 + $0x3a0] sm:$0xff]   ;;  %v4914_v2 = vld [vmem:[#allocation5 + $0x410] sm:$0xff]  }
 0x2b7   : > { %2993 = vmatprep.mubr.bf16.mxu1 %v2515_v6  ;;  %4347 = vmatprep.subr.bf16.mxu0 %v4867_v4  ;;  %v4915_v4 = vld [vmem:[#allocation5 + $0x3e8] sm:$0xff]   ;;  %v4918_v6 = vld [vmem:[#allocation5 + $0x418] sm:$0xff]  }
 0x2b8   : > { %4357 = vmatprep.subr.bf16.mxu1 %v4868_v27  ;;  %v4916_v27 = vld [vmem:[#allocation5 + $0x458] sm:$0xff]  }
 0x2ba   : > { %4348 = vmatpush3.bf16.msra.mxu0 %v4869_v7  ;;  %4358 = vmatpush3.bf16.msra.mxu1 %v4870_v8  ;;  %v4919_v7 = vld [vmem:[#allocation5 + $0x3f0] sm:$0xff]   ;;  %v4920_v8 = vld [vmem:[#allocation5 + $0x460] sm:$0xff]  }
 0x2bb   : > { %4359 = vmatprep.subr.bf16.mxu1 %v4871_v10  ;;  %4377 = vmatprep.subr.bf16.mxu0 %v4872_v9  ;;  %v4921_v10 = vld [vmem:[#allocation5 + $0x3b0] sm:$0xff]   ;;  %v4922_v9 = vld [vmem:[#allocation5 + $0x420] sm:$0xff]  }
 0x2bd   : > { %2954 = vmatmul.mubr.bf16.vlgmr.msra.gmra.mrb[72].mxu0 %v2506_v12  ;;  %v4925_v12 = vld [vmem:[#allocation5 + $0x3b8] sm:$0xff]  }
 0x2be   : > { %4360 = vmatpush3.bf16.msra.mxu1 %v4873_v11  ;;  %4378 = vmatpush3.bf16.msra.mxu0 %v4874_v29  ;;  %v4923_v11 = vld [vmem:[#allocation5 + $0x3f8] sm:$0xff]   ;;  %v4924_v29 = vld [vmem:[#allocation5 + $0x468] sm:$0xff]  }
 0x2bf   : > { %3033 = vmatprep.mubr.bf16.mxu0 %v2521_v16  ;;  %4361 = vmatprep.subr.bf16.mxu1 %v4875_v13  ;;  %v4926_v13 = vld [vmem:[#allocation5 + $0x428] sm:$0xff]   ;;  %v4928_v16 = vld [vmem:[#allocation5 + $0x4c0] sm:$0xff]  }
 0x2c0   : > { %4379 = vmatprep.subr.bf16.mxu0 %v4876_v14  ;;  %v4927_v14 = vld [vmem:[#allocation5 + $0x470] sm:$0xff]  }
 0x2c2   : > { %4362 = vmatpush3.bf16.msra.mxu1 %v4877_v17  ;;  %4380 = vmatpush3.bf16.msra.mxu0 %v4878_v18  ;;  %v4929_v17 = vld [vmem:[#allocation5 + $0x430] sm:$0xff]   ;;  %v4930_v18 = vld [vmem:[#allocation5 + $0x480] sm:$0xff]  }
 0x2c3   : > { %4363 = vmatprep.subr.bf16.mxu1 %v4879_v19  ;;  %4381 = vmatprep.subr.bf16.mxu0 %v4880_v20  ;;  %v2524_v19 = vshrl.u32 %v5665_v3, 16  ;;  %v4931_v20 = vld [vmem:[#allocation5 + $0x478] sm:$0xff]  }
 0x2c6   : > { %4364 = vmatpush3.bf16.msra.mxu1 %v4881_v21  ;;  %4382 = vmatpush3.bf16.msra.mxu0 %v4882_v23  ;;  %v4932_v21 = vld [vmem:[#allocation5 + $0x4c8] sm:$0xff]   ;;  %v3222_v23 = vrot.slane %v5648_v15, 1  ;;  %v3224_v15 = vrot.slane %v5656_v41, 1 }
 0x2c7   : > { %4365 = vmatprep.subr.bf16.mxu1 %v4883_v24  ;;  %4383 = vmatprep.subr.bf16.mxu0 %v4884_v25  ;;  %v4933_v24 = vld [vmem:[#allocation5 + $0x438] sm:$0xff]   ;;  %v4934_v25 = vld [vmem:[#allocation5 + $0x488] sm:$0xff]  }
 0x2c8   : > { %v4949_v41 = vld [vmem:[#allocation5 + $0x4a8] sm:$0xff]  }
 0x2ca   : > { %4366 = vmatpush3.bf16.msra.mxu1 %v4885_v26  ;;  %4384 = vmatpush3.bf16.msra.mxu0 %v4886_v28  ;;  %v4935_v26 = vld [vmem:[#allocation5 + $0x4d0] sm:$0xff]   ;;  %v4936_v28 = vld [vmem:[#allocation5 + $0x540] sm:$0xff]  }
 0x2cb   : > { %4367 = vmatprep.subr.bf16.mxu1 %v4887_v30  ;;  %4385 = vmatprep.subr.bf16.mxu0 %v4888_v31  ;;  %v4937_v30 = vld [vmem:[#allocation5 + $0x490] sm:$0xff]   ;;  %v4938_v31 = vld [vmem:[#allocation5 + $0x500] sm:$0xff]  }
 0x2ce   : > { %4368 = vmatpush3.bf16.msra.mxu1 %v4889_v32  ;;  %4386 = vmatpush3.bf16.msra.mxu0 %v4890_v33  ;;  %v3219_v32 = vrot.slane %v5640_v43, 1  ;;  %v4939_v33 = vld [vmem:[#allocation5 + $0x4d8] sm:$0xff]   ;;  %v4946_v43 = vld [vmem:[#allocation5 + $0x510] sm:$0xff]  }
 0x2cf   : > { %4369 = vmatprep.subr.bf16.mxu1 %v4891_v34  ;;  %4387 = vmatprep.subr.bf16.mxu0 %v4892_v35  ;;  %v4940_v34 = vld [vmem:[#allocation5 + $0x548] sm:$0xff]   ;;  %v4941_v35 = vld [vmem:[#allocation5 + $0x498] sm:$0xff]  }
 0x2d2   : > { %4370 = vmatpush3.bf16.msra.mxu1 %v4893_v36  ;;  %4388 = vmatpush3.bf16.msra.mxu0 %v4894_v37  ;;  %v4942_v36 = vld [vmem:[#allocation5 + $0x508] sm:$0xff]   ;;  %v4943_v37 = vld [vmem:[#allocation5 + $0x4e0] sm:$0xff]  }
 0x2d3   : > { %4389 = vmatprep.subr.bf16.mxu0 %v4895_v38  ;;  %4399 = vmatprep.subr.bf16.mxu1 %v4896_v39  ;;  %v4944_v38 = vld [vmem:[#allocation5 + $0x550] sm:$0xff]   ;;  %v4945_v39 = vld [vmem:[#allocation5 + $0x4a0] sm:$0xff]  }
 0x2d5   : > { %2994 = vmatmul.mubr.bf16.vlgmr.msra.gmra.mrb[84].mxu1 %v2512_v46  ;;  %v4950_v46 = vld [vmem:[#allocation5 + $0x518] sm:$0xff]  }
 0x2d6   : > { %4390 = vmatpush3.bf16.msra.mxu0 %v4897_v40  ;;  %4400 = vmatpush3.bf16.msra.mxu1 %v4898_v42  ;;  %v4947_v40 = vld [vmem:[#allocation5 + $0x4e8] sm:$0xff]   ;;  %v4948_v42 = vld [vmem:[#allocation5 + $0x558] sm:$0xff]  }
 0x2d7   : > { %3073 = vmatprep.mubr.bf16.mxu1 %v2527_v48  ;;  %4391 = vmatprep.subr.bf16.mxu0 %v4899_v47  ;;  %v4951_v47 = vld [vmem:[#allocation5 + $0x4f0] sm:$0xff]  }
 0x2d8   : > { %4401 = vmatprep.subr.bf16.mxu1 %v4900_v22  ;;  %v4952_v22 = vld [vmem:[#allocation5 + $0x560] sm:$0xff]   ;;  %v4953_v48 = vld [vmem:[#allocation5 + $0x4b0] sm:$0xff]  }
 0x2da   : > { %4392 = vmatpush3.bf16.msra.mxu0 %v4901_v49  ;;  %4402 = vmatpush3.bf16.msra.mxu1 %v4902_v50  ;;  %v4954_v49 = vld [vmem:[#allocation5 + $0x520] sm:$0xff]   ;;  %v4955_v50 = vld [vmem:[#allocation5 + $0x4f8] sm:$0xff]  }
 0x2db   : > { %4403 = vmatprep.subr.bf16.mxu1 %v4903_v51  ;;  %4421 = vmatprep.subr.bf16.mxu0 %v4904_v52  ;;  %v4956_v51 = vld [vmem:[#allocation5 + $0x568] sm:$0xff]   ;;  %v4957_v52 = vld [vmem:[#allocation5 + $0x4b8] sm:$0xff]  }
 0x2dd   : > { %3034 = vmatmul.mubr.bf16.vlgmr.msra.gmra.mrb[76].mxu0 %v2518_v55  ;;  %v4960_v55 = vld [vmem:[#allocation5 + $0x5c0] sm:$0xff]  }
 0x2de   : > { %4404 = vmatpush3.bf16.msra.mxu1 %v4905_v53  ;;  %4422 = vmatpush3.bf16.msra.mxu0 %v4906_v54  ;;  %v4958_v53 = vld [vmem:[#allocation5 + $0x528] sm:$0xff]   ;;  %v4959_v54 = vld [vmem:[#allocation5 + $0x570] sm:$0xff]  }
 0x2df   : > { %3651 = vmatprep.mubr.bf16.mxu0 %v3220_v58  ;;  %4405 = vmatprep.subr.bf16.mxu1 %v4907_v56  ;;  %v4961_v56 = vld [vmem:[#allocation5 + $0x530] sm:$0xff]   ;;  %v3221_v58 = vrot.slane %v5646_v61, 1  ;;  %v3223_v61 = vrot.slane %v5658_v45, 1  ;;  %v4978_v45 = vld [vmem:[#allocation5 + $0x5b8] sm:$0xff]  }
 0x2e0   : > { %4423 = vmatprep.subr.bf16.mxu0 %v4908_v57  ;;  %v4962_v57 = vld [vmem:[#allocation5 + $0x580] sm:$0xff]  }
 0x2e2   : > { %4406 = vmatpush3.bf16.msra.mxu1 %v4909_v59  ;;  %4424 = vmatpush3.bf16.msra.mxu0 %v4910_v60  ;;  %v4963_v59 = vld [vmem:[#allocation5 + $0x578] sm:$0xff]   ;;  %v4964_v60 = vld [vmem:[#allocation5 + $0x5c8] sm:$0xff]  }
 0x2e3   : > { %4407 = vmatprep.subr.bf16.mxu1 %v4911_v5  ;;  %4425 = vmatprep.subr.bf16.mxu0 %v4912_v62  ;;  %v3226_v5 = vrot.slane %v5663_v63, 1  ;;  %v4965_v62 = vld [vmem:[#allocation5 + $0x538] sm:$0xff]   ;;  %v4971_v63 = vld [vmem:[#allocation5 + $0x5e0] sm:$0xff]  }
 0x2e6   : > { %4408 = vmatpush3.bf16.msra.mxu1 %v4913_v1  ;;  %4426 = vmatpush3.bf16.msra.mxu0 %v4914_v2  ;;  %v4966_v1 = vld [vmem:[#allocation5 + $0x588] sm:$0xff]   ;;  %v4967_v2 = vld [vmem:[#allocation5 + $0x5d0] sm:$0xff]  }
 0x2e7   : > { %4409 = vmatprep.subr.bf16.mxu1 %v4915_v4  ;;  %4427 = vmatprep.subr.bf16.mxu0 %v4916_v27  ;;  %v4968_v4 = vld [vmem:[#allocation5 + $0x590] sm:$0xff]   ;;  %v4969_v27 = vld [vmem:[#allocation5 + $0x5d8] sm:$0xff]  }
 0x2ea   : > { %4410 = vmatpush3.bf16.msra.mxu1 %v4917_v44  ;;  %4428 = vmatpush3.bf16.msra.mxu0 %v4918_v6  ;;  %v4970_v44 = vld [vmem:[#allocation5 + $0x598] sm:$0xff]   ;;  %v4972_v6 = vld [vmem:[#allocation5 + $0x5a0] sm:$0xff]  }
 0x2eb   : > { %4411 = vmatprep.subr.bf16.mxu1 %v4919_v7  ;;  %4429 = vmatprep.subr.bf16.mxu0 %v4920_v8  ;;  %v4973_v7 = vld [vmem:[#allocation5 + $0x5e8] sm:$0xff]  }
 0x2ec   : > { %v4974_v8 = vld [vmem:[#allocation5 + $0x5a8] sm:$0xff]  }
 0x2ee   : > { %4412 = vmatpush3.bf16.msra.mxu1 %v4921_v10  ;;  %4430 = vmatpush3.bf16.msra.mxu0 %v4922_v9  ;;  %v4975_v10 = vld [vmem:[#allocation5 + $0x5f0] sm:$0xff]  }
 0x2ef   : > { %4413 = vmatprep.subr.bf16.mxu1 %v4923_v11  ;;  %4431 = vmatprep.subr.bf16.mxu0 %v4924_v29  ;;  %v4976_v9 = vld [vmem:[#allocation5 + $0x5b0] sm:$0xff]   ;;  %v4977_v11 = vld [vmem:[#allocation5 + $0x5f8] sm:$0xff]   ;;  %v3225_v29 = vrot.slane %v5665_v3, 1  ;;  %v3782_v3 = vld [vmem:[%s5793_s7 + $0x8] sm:$0xff] }
 0x2f2   : > { %4414 = vmatpush3.bf16.msra.mxu1 %v4925_v12  ;;  %4432 = vmatpush3.bf16.msra.mxu0 %v4926_v13 }
 0x2f3   : > { %4433 = vmatprep.subr.bf16.mxu0 %v4927_v14  ;;  %4443 = vmatprep.subr.bf16.mxu1 %v4928_v16 }
 0x2f5   : > { %3074 = vmatmul.mubr.bf16.vlgmr.msra.gmra.mrb[88].mxu1 %v2524_v19 }
 0x2f6   : > { %4434 = vmatpush3.bf16.msra.mxu0 %v4929_v17  ;;  %4444 = vmatpush3.bf16.msra.mxu1 %v4930_v18 }
 0x2f7   : > { %3691 = vmatprep.mubr.bf16.mxu1 %v3222_v23  ;;  %4435 = vmatprep.subr.bf16.mxu0 %v4931_v20 }
 0x2f8   : > { %4445 = vmatprep.subr.bf16.mxu1 %v4932_v21 }
 0x2fa   : > { %4436 = vmatpush3.bf16.msra.mxu0 %v4933_v24  ;;  %4446 = vmatpush3.bf16.msra.mxu1 %v4934_v25 }
 0x2fb   : > { %4447 = vmatprep.subr.bf16.mxu1 %v4935_v26  ;;  %4465 = vmatprep.subr.bf16.mxu0 %v4936_v28  ;;  %v3781_v28 = vld [vmem:[%s5793_s7] sm:$0xff] }
 0x2fd   : > { %3652 = vmatmul.mubr.bf16.vlgmr.msra.gmra.mrb[80].mxu0 %v3219_v32  ;;  %v4690_v32 = vpack.c.bf16 %v3782_v3, %v3781_v28 }
 0x2fe   : > { %4448 = vmatpush3.bf16.msra.mxu1 %v4937_v30  ;;  %4466 = vmatpush3.bf16.msra.mxu0 %v4938_v31 }
 0x2ff   : > { %3731 = vmatprep.mubr.bf16.mxu0 %v3224_v15  ;;  %4449 = vmatprep.subr.bf16.mxu1 %v4939_v33 }
 0x300   : > { %4467 = vmatprep.subr.bf16.mxu0 %v4940_v34  ;;  %v5146_v34 = vmov 0.0|0.0  }
 0x302   : > { %4450 = vmatpush3.bf16.msra.mxu1 %v4941_v35  ;;  %4468 = vmatpush3.bf16.msra.mxu0 %v4942_v36  ;;  %v3783_v35 = vld [vmem:[%s5793_s7 + $0x10] sm:$0xff]  ;;  %v3784_v36 = vld [vmem:[%s5793_s7 + $0x18] sm:$0xff] }
 0x303   : > { %4451 = vmatprep.subr.bf16.mxu1 %v4943_v37  ;;  %4469 = vmatprep.subr.bf16.mxu0 %v4944_v38  ;;  %v4693_v37 = vpack.c.bf16 %v3784_v36, %v3783_v35  ;;  %v3785_v38 = vld [vmem:[%s5793_s7 + $0x20] sm:$0xff] }
 0x306   : > { %4452 = vmatpush3.bf16.msra.mxu1 %v4945_v39  ;;  %4470 = vmatpush3.bf16.msra.mxu0 %v4946_v43  ;;  %v3786_v39 = vld [vmem:[%s5793_s7 + $0x28] sm:$0xff] }
 0x307   : > { %4453 = vmatprep.subr.bf16.mxu1 %v4947_v40  ;;  %4471 = vmatprep.subr.bf16.mxu0 %v4948_v42  ;;  %v4696_v43 = vpack.c.bf16 %v3786_v39, %v3785_v38  ;;  %v3787_v40 = vld [vmem:[%s5793_s7 + $0x30] sm:$0xff]  ;;  %v3788_v42 = vld [vmem:[%s5793_s7 + $0x38] sm:$0xff] }
 0x30a   : > { %4454 = vmatpush3.bf16.msra.mxu1 %v4949_v41  ;;  %4472 = vmatpush3.bf16.msra.mxu0 %v4950_v46  ;;  %v4699_v41 = vpack.c.bf16 %v3788_v42, %v3787_v40  ;;  %v3789_v46 = vld [vmem:[%s5793_s7 + $0x40] sm:$0xff] }
 0x30b   : > { %4455 = vmatprep.subr.bf16.mxu1 %v4951_v47  ;;  %4473 = vmatprep.subr.bf16.mxu0 %v4952_v22  ;;  %v3790_v47 = vld [vmem:[%s5793_s7 + $0x48] sm:$0xff] }
 0x30c   : > { %v4702_v22 = vpack.c.bf16 %v3790_v47, %v3789_v46 }
 0x30e   : > { %4456 = vmatpush3.bf16.msra.mxu1 %v4953_v48  ;;  %4474 = vmatpush3.bf16.msra.mxu0 %v4954_v49  ;;  %v3791_v48 = vld [vmem:[%s5793_s7 + $0x50] sm:$0xff]  ;;  %v3792_v49 = vld [vmem:[%s5793_s7 + $0x58] sm:$0xff] }
 0x30f   : > { %4457 = vmatprep.subr.bf16.mxu1 %v4955_v50  ;;  %4475 = vmatprep.subr.bf16.mxu0 %v4956_v51  ;;  %v4705_v50 = vpack.c.bf16 %v3792_v49, %v3791_v48 }
 0x312   : > { %4458 = vmatpush3.bf16.msra.mxu1 %v4957_v52  ;;  %4476 = vmatpush3.bf16.msra.mxu0 %v4958_v53  ;;  %v3793_v53 = vld [vmem:[%s5793_s7 + $0x60] sm:$0xff] }
 0x313   : > { %4477 = vmatprep.subr.bf16.mxu0 %v4959_v54  ;;  %4487 = vmatprep.subr.bf16.mxu1 %v4960_v55  ;;  %v3794_v54 = vld [vmem:[%s5793_s7 + $0x68] sm:$0xff] }
 0x315   : > { %3692 = vmatmul.mubr.bf16.vlgmr.msra.gmra.mrb[92].mxu1 %v3221_v58 }
 0x316   : > { %4478 = vmatpush3.bf16.msra.mxu0 %v4961_v56  ;;  %4488 = vmatpush3.bf16.msra.mxu1 %v4962_v57  ;;  %v4708_v57 = vpack.c.bf16 %v3794_v54, %v3793_v53 }
 0x317   : > { %3771 = vmatprep.mubr.bf16.mxu1 %v3226_v5  ;;  %4479 = vmatprep.subr.bf16.mxu0 %v4963_v59  ;;  %v3796_v5 = vld [vmem:[%s5793_s7 + $0x78] sm:$0xff] }
 0x318   : > { %4489 = vmatprep.subr.bf16.mxu1 %v4964_v60  ;;  %v3795_v60 = vld [vmem:[%s5793_s7 + $0x70] sm:$0xff] }
 0x31a   : > { %4480 = vmatpush3.bf16.msra.mxu0 %v4965_v62  ;;  %4490 = vmatpush3.bf16.msra.mxu1 %v4966_v1  ;;  %v4711_v62 = vpack.c.bf16 %v3796_v5, %v3795_v60 }
 0x31b   : > { %4491 = vmatprep.subr.bf16.mxu1 %v4967_v2  ;;  %4689 = vmatprep.subr.bf16.mxu0 %v5146_v34 }
 0x31d   : > { %3732 = vmatmul.mubr.bf16.vlgmr.msra.gmra.mrb[84].mxu0 %v3223_v61 }
 0x31e   : > { %4492 = vmatpush3.bf16.msra.mxu1 %v4968_v4  ;;  %4691 = vmatpush3.bf16.msra.mxu0 %v4690_v32 }
 0x31f   : > { %4493 = vmatprep.subr.bf16.mxu1 %v4969_v27  ;;  %4692 = vmatprep.subr.bf16.mxu0 %v5146_v34 }
 0x320   : > { %4558 = vmatprep.mubr.msk.f32.mxu0 %vm5147_vm2, %v5144_v0  ;;  %v1702_v0 = vld [vmem:[%s5792_s6] sm:$0x1] }
 0x322   : > { %4494 = vmatpush3.bf16.msra.mxu1 %v4970_v44  ;;  %4694 = vmatpush3.bf16.msra.mxu0 %v4693_v37 }
 0x323   : > { %4495 = vmatprep.subr.bf16.mxu1 %v4971_v63  ;;  %4695 = vmatprep.subr.bf16.mxu0 %v5146_v34 }
 0x326   : > { %4496 = vmatpush3.bf16.msra.mxu1 %v4972_v6  ;;  %4697 = vmatpush3.bf16.msra.mxu0 %v4696_v43 }
 0x327   : > { %4497 = vmatprep.subr.bf16.mxu1 %v4973_v7  ;;  %4698 = vmatprep.subr.bf16.mxu0 %v5146_v34 }
 0x32a   : > { %4498 = vmatpush3.bf16.msra.mxu1 %v4974_v8  ;;  %4700 = vmatpush3.bf16.msra.mxu0 %v4699_v41 }
 0x32b   : > { %4499 = vmatprep.subr.bf16.mxu1 %v4975_v10  ;;  %4701 = vmatprep.subr.bf16.mxu0 %v5146_v34 }
 0x32e   : > { %4500 = vmatpush3.bf16.msra.mxu1 %v4976_v9  ;;  %4703 = vmatpush3.bf16.msra.mxu0 %v4702_v22 }
 0x32f   : > { %4501 = vmatprep.subr.bf16.mxu1 %v4977_v11  ;;  %4704 = vmatprep.subr.bf16.mxu0 %v5146_v34 }
 0x332   : > { %4502 = vmatpush3.bf16.msra.mxu1 %v4978_v45  ;;  %4706 = vmatpush3.bf16.msra.mxu0 %v4705_v50  ;;  %v3797_v50 = vld [vmem:[%s5794_s8] sm:$0x1] }
 0x333   : > { %4707 = vmatprep.subr.bf16.mxu0 %v5146_v34 }
 0x335   : > { %3772 = vmatmul.mubr.bf16.vlgmr.msra.gmra.mrb[96].mxu1 %v3225_v29  ;;  %v4261_v12 = vpop.f32.mrb[64].mxu0 }
 0x336   : > { %v4262_v13 = vpop.f32.mrb[65].mxu0  ;;  %4709 = vmatpush3.bf16.msra.mxu0 %v4708_v57 }
 0x337   : > { %v4263_v14 = vadd.f32 %v4262_v13, %v4261_v12  ;;  %v4264_v16 = vpop.f32.mrb[66].mxu0  ;;  %4710 = vmatprep.subr.bf16.mxu0 %v5146_v34 }
 0x338   : > { %v4265_v17 = vpop.f32.mrb[67].mxu0 }
 0x33a   : > { %4712 = vmatpush3.bf16.msra.mxu0 %v4711_v62 }
 0x348   : > { %v4283_v18 = vpop.f32.mrb[76].mxu1 }
 0x349   : > { %v4284_v19 = vpop.f32.mrb[77].mxu1 }
 0x34a   : > { %v4285_v20 = vadd.f32 %v4284_v19, %v4283_v18  ;;  %v4286_v21 = vpop.f32.mrb[78].mxu1 }
 0x34b   : > { %v4287_v23 = vpop.f32.mrb[79].mxu1 }
 0x34c   : > { %v2290_v24 = vadd.f32 %v4285_v20, %v4263_v14 }
 0x370   : > { %v4305_v25 = vpop.f32.mrb[68].mxu0 }
 0x371   : > { %v4306_v26 = vpop.f32.mrb[69].mxu0 }
 0x372   : > { %v4307_v30 = vadd.f32 %v4306_v26, %v4305_v25  ;;  %v4308_v31 = vpop.f32.mrb[70].mxu0 }
 0x373   : > { %v4309_v33 = vpop.f32.mrb[71].mxu0 }
 0x374   : > { %v2330_v15 = vadd.f32 %v4307_v30, %v2290_v24 }
 0x388   : > { %v4327_v51 = vpop.f32.mrb[80].mxu1 }
 0x389   : > { %v4328_v52 = vpop.f32.mrb[81].mxu1 }
 0x38a   : > { %v4329_v55 = vadd.f32 %v4328_v52, %v4327_v51  ;;  %v4330_v56 = vpop.f32.mrb[82].mxu1 }
 0x38b   : > { %v4331_v58 = vpop.f32.mrb[83].mxu1 }
 0x38c   : > { %v2370_v59 = vadd.f32 %v4329_v55, %v2330_v15 }
 0x38e   : > { %v2375_v20 = vadd.f32 %v2370_v59, %v1702_v0 }
 0x390   : > { %v4349_v1 = vpop.f32.mrb[72].mxu0 }
 0x391   : > { %v4350_v2 = vpop.f32.mrb[73].mxu0 }
 0x392   : > { %v4351_v4 = vadd.f32 %v4350_v2, %v4349_v1  ;;  %v4352_v61 = vpop.f32.mrb[74].mxu0 }
 0x393   : > { %v4353_v27 = vpop.f32.mrb[75].mxu0 }
 0x3a8   : > { %v4371_v44 = vpop.f32.mrb[84].mxu1 }
 0x3a9   : > { %v4372_v63 = vpop.f32.mrb[85].mxu1 }
 0x3aa   : > { %v4373_v6 = vadd.f32 %v4372_v63, %v4371_v44  ;;  %v4374_v7 = vpop.f32.mrb[86].mxu1 }
 0x3ab   : > { %v4375_v8 = vpop.f32.mrb[87].mxu1 }
 0x3ac   : > { %v2996_v10 = vadd.f32 %v4373_v6, %v4351_v4 }
 0x3b0   : > { %v4393_v9 = vpop.f32.mrb[76].mxu0 }
 0x3b1   : > { %v4394_v11 = vpop.f32.mrb[77].mxu0 }
 0x3b2   : > { %v4395_v45 = vadd.f32 %v4394_v11, %v4393_v9  ;;  %v4396_v29 = vpop.f32.mrb[78].mxu0 }
 0x3b3   : > { %v4397_v12 = vpop.f32.mrb[79].mxu0 }
 0x3b4   : > { %v3036_v13 = vadd.f32 %v4395_v45, %v2996_v10 }
 0x3c8   : > { %v4415_v14 = vpop.f32.mrb[88].mxu1 }
 0x3c9   : > { %v4416_v16 = vpop.f32.mrb[89].mxu1 }
 0x3ca   : > { %v4417_v17 = vadd.f32 %v4416_v16, %v4415_v14  ;;  %v4418_v18 = vpop.f32.mrb[90].mxu1 }
 0x3cb   : > { %v4419_v19 = vpop.f32.mrb[91].mxu1 }
 0x3cc   : > { %v3076_v21 = vadd.f32 %v4417_v17, %v3036_v13 }
 0x3ce   : > { %v3081_v23 = vadd.f32 %v3076_v21, %v2375_v20 }
 0x3d0   : > { %v4437_v24 = vpop.f32.mrb[80].mxu0 }
 0x3d1   : > { %v4438_v25 = vpop.f32.mrb[81].mxu0 }
 0x3d2   : > { %v4439_v26 = vadd.f32 %v4438_v25, %v4437_v24  ;;  %v4440_v28 = vpop.f32.mrb[82].mxu0 }
 0x3d3   : > { %v4441_v3 = vpop.f32.mrb[83].mxu0 }
 0x3e8   : > { %v4459_v30 = vpop.f32.mrb[92].mxu1 }
 0x3e9   : > { %v4460_v31 = vpop.f32.mrb[93].mxu1 }
 0x3ea   : > { %v4461_v32 = vadd.f32 %v4460_v31, %v4459_v30  ;;  %v4462_v33 = vpop.f32.mrb[94].mxu1 }
 0x3eb   : > { %v4463_v34 = vpop.f32.mrb[95].mxu1 }
 0x3ec   : > { %v3694_v15 = vadd.f32 %v4461_v32, %v4439_v26 }
 0x3f0   : > { %v4481_v35 = vpop.f32.mrb[84].mxu0 }
 0x3f1   : > { %v4482_v36 = vpop.f32.mrb[85].mxu0 }
 0x3f2   : > { %v4483_v37 = vadd.f32 %v4482_v36, %v4481_v35  ;;  %v4484_v38 = vpop.f32.mrb[86].mxu0 }
 0x3f3   : > { %v4485_v39 = vpop.f32.mrb[87].mxu0 }
 0x3f4   : > { %v3734_v43 = vadd.f32 %v4483_v37, %v3694_v15 }
 0x408   : > { %v4503_v40 = vpop.f32.mrb[96].mxu1 }
 0x409   : > { %v4504_v42 = vpop.f32.mrb[97].mxu1 }
 0x40a   : > { %v4505_v41 = vadd.f32 %v4504_v42, %v4503_v40  ;;  %v4506_v46 = vpop.f32.mrb[98].mxu1 }
 0x40b   : > { %v4507_v47 = vpop.f32.mrb[99].mxu1 }
 0x40c   : > { %v3774_v22 = vadd.f32 %v4505_v41, %v3734_v43 }
 0x40e   : > { %v3779_v48 = vadd.f32 %v3774_v22, %v3081_v23 }
 0x410   : > { %v3780_v49 = vmax.f32 %v3779_v48, 0.0 }
 0x412   : > { %4559 = vmatmul.mubr.f32.vlgmr.msra.gmra.mrb[62].mxu0 %v3780_v49 }
 0x4e5   : > { %v3864_v51 = vpop.f32.mrb[62].mxu0 }
 0x4e6   : > { %v3865_v52 = vadd.f32 %v3864_v51, %v3797_v50  ;;  %v4560_v53 = vpop.f32.mrb[63].mxu0 }
 0x4e8   : > { %3868 = vst [vmem:[%s354_s28] sm:$0x1] %v3865_v52 }
 0x4e9   : > { %5080 = shalt.err (!%p5077_p11)
}
 0x4ea   : > { %s5081_s15 = scalar_lea.hbm %s5744_s17, 16  ;;  %s5085_s24 = scalar_lea.hbm %s5795_s9, 32 }
 0x4eb   : > { %p5082_p13 = scmp.ne.s32.totalorder %s5744_s17, %s5081_s15  ;;  %p5086_p6 = scmp.lt.u32.totalorder %s5744_s17, %s5795_s9 }
 0x4ec   : > { %p5087_p9 = scmp.lt.u32.totalorder %s5085_s24, %s5081_s15  ;;  %p5089_p12 = scmp.lt.u32.totalorder %s5081_s15, %s5744_s17 }
 0x4ed   : > { %p5083_p0 = pnand %p5082_p13, %p5814_p1 }
 0x4ee   : > { %p5088_p10 = por %p5087_p9, %p5086_p6 }
 0x4ef   : > { %p5084_p5 = pneg %p5083_p0 }
 0x4f0   : > { %p5090_p2 = por %p5089_p12, %p5088_p10 }
 0x4f2   : > { %p5091_p3 = pnand %p5090_p2, %p5084_p5 }
 0x4f4   : > { %5094 = shalt.err (!%p5091_p3)
}
 0x4f5   : > { %4723 = dma.vmem_to_hbm [thread:$0]  (%p5814_p1), %s5746_s29, 16, %s5744_s17, %s3870_s22  }
 0x4f6 PF: > { %p4740_p4 = scmp.ge.s32.totalorder %s5137_s12, 2  ;;  %s3894_s28 = sand.u32 1, %s5125_s30  }
 0x4f7   : > { %p5815_p7 = scmp.ne.s32.totalorder %s5806_s20, 0  ;;  %s3895_s14 = scalar_lea.sflag [#allocation4], %s3894_s28 }
 0x4f9   : > { %p4733_p8 = pnand %p4740_p4, %p5815_p7 }
 0x4fb   : > { %5120 = dma.done.wait (!%p4733_p8), %s3895_s14, 16  }
 0x4fc   : > { %5122 = vsyncadd (!%p4733_p8), %s3895_s14, 4294967280  ;;  %s5816_s12 = sld [smem:[#allocation12_spill]]  ;;  %s5817_s16 = sld [smem:[#allocation11_spill]] }
 0x4fd   : > { %s5818_s11 = sld [smem:[#allocation13_spill]]  ;;  %s5819_s30 = smov %s5129_s10 }
 0x502   : > { %p21_p11 = scmp.ge.s32.totalorder %s5816_s12, 4   ;;  %s5820_s10 = smov %s5817_s16 }
 0x504   :  { %23 = sbr.rel (!%p21_p11) target bundleno = 5 (0x5), region = 102 }
 0x50b   :  { %3899 = vsyncpa [#allocation3], 1 }
 0x50c   :  { %3901 = vsyncpa [#allocation3 + $0x1], 1 }
 0x50d   :  { %3902 = vsyncpa [#allocation6], 1 }
 0x50e   :  { %3903 = vsyncpa [#allocation4], 1 }
 0x50f   :  { %3905 = vsyncpa [#allocation4 + $0x1], 1 }

</bundles_post_ra>
